<compile_context>
chip_gen: v6e
topology: v6e:2x2x1
jax: 0.10.0
libtpu: 0.0.40
codegen_flags: <defaults>
</compile_context>

<pallas_src>
import math

import numpy as np
import jax
import jax.numpy as jnp
from jax.experimental import pallas as pl
from jax.experimental.pallas import tpu as pltpu

# ------------------------------- configuration -------------------------------
VOCAB = 33
LANES = 128                  # lane-dense output width / slab width
EMBED = 32
NHEAD = 4
DHEAD = EMBED // NHEAD
FFN = 4 * EMBED
NLAYERS = 2
PAD_IDX = 1
MASK_IDX = 32
EPS = 1e-5
REP_COL = 96                 # lanes [REP_COL, REP_COL+EMBED) of the output = rep
NEG_INF = -1e9


# ------------------------------ shared helpers --------------------------------
def _ln(x, g, b):
    mu = jnp.mean(x, axis=-1, keepdims=True)
    xc = x - mu
    var = jnp.mean(xc * xc, axis=-1, keepdims=True)
    return xc * jax.lax.rsqrt(var + EPS) * g + b


def _gelu(x):  # exact (erf) GELU, as used by ESM2
    return 0.5 * x * (1.0 + jax.lax.erf(x / math.sqrt(2.0)))


def _round8(n):
    return ((n + 7) // 8) * 8


# ------------------------------- slab layout -----------------------------------
def _slab_layout(batch, seq):
    """Static (row_offset, rows, cols) for every weight/constant in the slab."""
    bt = batch * seq
    ns = NHEAD * bt
    layout = {}
    row = 0

    def add(name, rows, cols):
        nonlocal row
        layout[name] = (row, rows, cols)
        row += _round8(rows)          # keep every block 8-sublane aligned

    for li in range(NLAYERS):
        p = f"l{li}_"
        add(p + "w_qkv", EMBED, 3 * EMBED)
        add(p + "b_qkv", 1, 3 * EMBED)
        add(p + "wo", EMBED, EMBED)
        add(p + "bo", 1, EMBED)
        add(p + "ln1_g", 1, EMBED)
        add(p + "ln1_b", 1, EMBED)
        add(p + "ln2_g", 1, EMBED)
        add(p + "ln2_b", 1, EMBED)
        add(p + "w1", EMBED, FFN)
        add(p + "b1", 1, FFN)
        add(p + "w2", FFN, EMBED)
        add(p + "b2", 1, EMBED)
    add("emb_ln_g", 1, EMBED)
    add("emb_ln_b", 1, EMBED)
    add("head_dense_w", EMBED, EMBED)
    add("head_dense_b", 1, EMBED)
    add("head_ln_g", 1, EMBED)
    add("head_ln_b", 1, EMBED)
    add("embed_T_pad", EMBED, LANES)      # tied LM projection, zero-padded to 128
    add("lm_bias_pad", 1, LANES)
    add("rep_place", EMBED, LANES)        # places rep at lanes [REP_COL, REP_COL+E)
    add("cosf", bt, EMBED)                # rotary cos, flattened positions, per head
    add("sinf", bt, EMBED)
    add("rot", EMBED, EMBED)              # block-diag rotate_half matrix
    add("head_mask", ns, EMBED)           # 1 iff row's head owns that embed column
    add("blk_ones", ns, ns)               # block-diag ones: per-head softmax sums
    return layout, row


# ------------------------------ parameter init ---------------------------------
def init_params(key):
    ks = jax.random.split(key, 8 + NLAYERS)

    def nrm(k, shape):
        return jax.random.normal(k, shape, jnp.float32) * 0.02

    params = {
        "embed": nrm(ks[0], (VOCAB, EMBED)),
        "emb_ln_g": jnp.ones((1, EMBED), jnp.float32),
        "emb_ln_b": jnp.zeros((1, EMBED), jnp.float32),
        "head_dense_w": nrm(ks[1], (EMBED, EMBED)),
        "head_dense_b": nrm(ks[2], (1, EMBED)),
        "head_ln_g": jnp.ones((1, EMBED), jnp.float32),
        "head_ln_b": jnp.zeros((1, EMBED), jnp.float32),
        "lm_bias": jnp.zeros((1, VOCAB), jnp.float32),
    }
    layers = []
    for li in range(NLAYERS):
        lk = jax.random.split(ks[3 + li], 10)
        layers.append(dict(
            ln1_g=jnp.ones((1, EMBED), jnp.float32), ln1_b=jnp.zeros((1, EMBED), jnp.float32),
            wq=nrm(lk[0], (EMBED, EMBED)), bq=nrm(lk[1], (1, EMBED)),
            wk=nrm(lk[2], (EMBED, EMBED)), bk=nrm(lk[3], (1, EMBED)),
            wv=nrm(lk[4], (EMBED, EMBED)), bv=nrm(lk[5], (1, EMBED)),
            wo=nrm(lk[6], (EMBED, EMBED)), bo=nrm(lk[7], (1, EMBED)),
            ln2_g=jnp.ones((1, EMBED), jnp.float32), ln2_b=jnp.zeros((1, EMBED), jnp.float32),
            w1=nrm(lk[8], (EMBED, FFN)), b1=jnp.zeros((1, FFN), jnp.float32),
            w2=nrm(lk[9], (FFN, EMBED)), b2=jnp.zeros((1, EMBED), jnp.float32),
        ))
    params["layers"] = layers
    return params


def pack_params(params, batch, seq):
    """One-time packing of all weights + constants into a single (rows,128) slab."""
    layout, nrows = _slab_layout(batch, seq)
    slab = np.zeros((nrows, LANES), np.float32)

    def put(name, arr):
        off, rows, cols = layout[name]
        slab[off:off + rows, :cols] = np.asarray(arr, np.float32).reshape(rows, cols)

    scale = DHEAD ** -0.5
    for li, lp in enumerate(params["layers"]):
        p = f"l{li}_"
        # Fold 1/sqrt(dhead) into the Q projection at pack time (rotary commutes).
        wq = np.asarray(lp["wq"]) * scale
        bq = np.asarray(lp["bq"]) * scale
        put(p + "w_qkv", np.concatenate([wq, np.asarray(lp["wk"]), np.asarray(lp["wv"])], 1))
        put(p + "b_qkv", np.concatenate([bq, np.asarray(lp["bk"]), np.asarray(lp["bv"])], 1))
        put(p + "wo", lp["wo"]); put(p + "bo", lp["bo"])
        put(p + "ln1_g", lp["ln1_g"]); put(p + "ln1_b", lp["ln1_b"])
        put(p + "ln2_g", lp["ln2_g"]); put(p + "ln2_b", lp["ln2_b"])
        put(p + "w1", lp["w1"]); put(p + "b1", lp["b1"])
        put(p + "w2", lp["w2"]); put(p + "b2", lp["b2"])

    put("emb_ln_g", params["emb_ln_g"]); put("emb_ln_b", params["emb_ln_b"])
    put("head_dense_w", params["head_dense_w"]); put("head_dense_b", params["head_dense_b"])
    put("head_ln_g", params["head_ln_g"]); put("head_ln_b", params["head_ln_b"])

    etp = np.zeros((EMBED, LANES), np.float32)
    etp[:, :VOCAB] = np.asarray(params["embed"]).T
    put("embed_T_pad", etp)
    lbp = np.zeros((1, LANES), np.float32)
    lbp[:, :VOCAB] = np.asarray(params["lm_bias"])
    put("lm_bias_pad", lbp)

    repp = np.zeros((EMBED, LANES), np.float32)
    repp[np.arange(EMBED), REP_COL + np.arange(EMBED)] = 1.0
    put("rep_place", repp)

    # Rotary tables for flattened batch*seq positions, tiled over heads.
    inv_freq = 1.0 / (10000.0 ** (np.arange(0, DHEAD, 2, dtype=np.float32) / DHEAD))
    t = np.arange(seq, dtype=np.float32)
    emb = np.concatenate([t[:, None] * inv_freq[None, :]] * 2, axis=-1)   # (T, DHEAD)
    put("cosf", np.tile(np.tile(np.cos(emb), (1, NHEAD)), (batch, 1)))
    put("sinf", np.tile(np.tile(np.sin(emb), (1, NHEAD)), (batch, 1)))

    half = DHEAD // 2
    r = np.zeros((DHEAD, DHEAD), np.float32)
    r[half:, :half] = -np.eye(half, dtype=np.float32)
    r[:half, half:] = np.eye(half, dtype=np.float32)
    put("rot", np.kron(np.eye(NHEAD, dtype=np.float32), r))    # x @ rot == rotate_half(x)

    bt, ns = batch * seq, NHEAD * batch * seq
    hrow = np.arange(ns) // bt
    hcol = np.arange(EMBED) // DHEAD
    put("head_mask", (hrow[:, None] == hcol[None, :]).astype(np.float32))
    brow = np.arange(ns) // bt
    put("blk_ones", (brow[:, None] == brow[None, :]).astype(np.float32))

    return {"slab": jnp.asarray(slab), "embed": jnp.asarray(params["embed"])}


# ------------------------- fully fused forward kernel --------------------------
def _make_kernel(layout):
    def g(slab_ref, name):
        off, rows, cols = layout[name]
        return slab_ref[off:off + rows, 0:cols]        # static slice of the VMEM slab

    def kernel(x_ref, bias_ref, slab_ref, out_ref):
        x = x_ref[...]                  # (BT, E)  flattened batch*seq hidden state
        bias = bias_ref[...]            # (BT, H*BT) block-diag batch + key-pad bias
        cosf = g(slab_ref, "cosf")
        sinf = g(slab_ref, "sinf")
        rot = g(slab_ref, "rot")
        hm = g(slab_ref, "head_mask")   # (H*BT, E)
        blk = g(slab_ref, "blk_ones")   # (H*BT, H*BT)

        for li in range(NLAYERS):       # static unroll over layers
            p = f"l{li}_"
            # --- self-attention (pre-LN) ---
            h = _ln(x, g(slab_ref, p + "ln1_g"), g(slab_ref, p + "ln1_b"))
            qkv = jnp.dot(h, g(slab_ref, p + "w_qkv"),
                          preferred_element_type=jnp.float32) + g(slab_ref, p + "b_qkv")
            q = qkv[:, 0:EMBED]                    # 1/sqrt(dhead) folded at pack time
            k = qkv[:, EMBED:2 * EMBED]
            v = qkv[:, 2 * EMBED:3 * EMBED]
            # rotary: x*cos + rotate_half(x)*sin, per head (rot is block-diagonal)
            q = q * cosf + jnp.dot(q, rot, preferred_element_type=jnp.float32) * sinf
            k = k * cosf + jnp.dot(k, rot, preferred_element_type=jnp.float32) * sinf

            # lane-dense multi-head attention: head-masked replicated K/V
            kb = jnp.concatenate([k] * NHEAD, axis=0) * hm          # (H*BT, E)
            vb = jnp.concatenate([v] * NHEAD, axis=0) * hm          # (H*BT, E)
            s = jax.lax.dot_general(q, kb, (((1,), (1,)), ((), ())),
                                    preferred_element_type=jnp.float32)  # (BT, H*BT)
            s = s + bias
            s = s - jnp.max(s, axis=-1, keepdims=True)   # softmax is shift-invariant per head
            e = jnp.exp(s)
            denom = jnp.dot(e, blk, preferred_element_type=jnp.float32)  # per-head sums on MXU
            prob = e * pl.reciprocal(denom, approx=True)
            ctx = jnp.dot(prob, vb, preferred_element_type=jnp.float32)  # (BT, E)
            x = x + jnp.dot(ctx, g(slab_ref, p + "wo"),
                            preferred_element_type=jnp.float32) + g(slab_ref, p + "bo")

            # --- feed-forward (pre-LN) ---
            h2 = _ln(x, g(slab_ref, p + "ln2_g"), g(slab_ref, p + "ln2_b"))
            f = _gelu(jnp.dot(h2, g(slab_ref, p + "w1"),
                              preferred_element_type=jnp.float32) + g(slab_ref, p + "b1"))
            x = x + jnp.dot(f, g(slab_ref, p + "w2"),
                            preferred_element_type=jnp.float32) + g(slab_ref, p + "b2")

        # ------------------------------- LM head ---------------------------------
        rep = _ln(x, g(slab_ref, "emb_ln_g"), g(slab_ref, "emb_ln_b"))   # representations[30]
        hlm = _gelu(jnp.dot(rep, g(slab_ref, "head_dense_w"),
                            preferred_element_type=jnp.float32) + g(slab_ref, "head_dense_b"))
        hlm = _ln(hlm, g(slab_ref, "head_ln_g"), g(slab_ref, "head_ln_b"))
        logits = jnp.dot(hlm, g(slab_ref, "embed_T_pad"),
                         preferred_element_type=jnp.float32) + g(slab_ref, "lm_bias_pad")
        # Place rep into lanes [REP_COL, REP_COL+E) via a constant matmul so the
        # single output store is fully lane-dense (one 128-wide vst stream).
        rep_hi = jnp.dot(rep, g(slab_ref, "rep_place"), preferred_element_type=jnp.float32)
        out_ref[...] = logits + rep_hi

    return kernel


# ---------------------------------- wrapper -------------------------------------
def esm2_mlm_forward(input_ids, packed, output_attentions=False,
                     output_representation=False):
    B, T = input_ids.shape
    BT, NS = B * T, NHEAD * B * T
    layout, nrows = _slab_layout(B, T)
    assert packed["slab"].shape == (nrows, LANES), "slab packed for a different (batch, seq)"

    pad_mask = input_ids == PAD_IDX

    # Embedding + ESM2 token-dropout rescaling + pad zeroing (cheap glue, not hot path).
    x = packed["embed"][input_ids]                                    # (B, T, E)
    x = jnp.where((input_ids == MASK_IDX)[..., None], 0.0, x)
    mask_ratio_train = 0.15 * 0.8
    src_len = jnp.maximum(jnp.sum(jnp.logical_not(pad_mask), -1).astype(jnp.float32), 1.0)
    mask_ratio_obs = jnp.sum(input_ids == MASK_IDX, -1).astype(jnp.float32) / src_len
    rescale = (1.0 - mask_ratio_train) / jnp.maximum(1.0 - mask_ratio_obs, 1e-6)  # NaN guard
    x = x * rescale[:, None, None]
    x = x * (1.0 - pad_mask[..., None].astype(jnp.float32))
    x = x.reshape(BT, EMBED)

    # Block-diagonal (no cross-batch attention) + key-padding bias, pre-tiled over heads.
    batch_of = jnp.repeat(jnp.arange(B), T)
    cross = jnp.where(batch_of[:, None] == batch_of[None, :], 0.0, NEG_INF)
    keyb = jnp.where(pad_mask, NEG_INF, 0.0).reshape(1, BT)
    bias = jnp.tile((cross + keyb).astype(jnp.float32), (1, NHEAD))   # (BT, H*BT)

    kernel = _make_kernel(layout)
    out = pl.pallas_call(
        kernel,
        out_shape=jax.ShapeDtypeStruct((BT, LANES), jnp.float32),
        grid=(1,),                       # batch folded into one grid step
        in_specs=[pl.BlockSpec((BT, EMBED), lambda i: (0, 0)),
                  pl.BlockSpec((BT, NS), lambda i: (0, 0)),
                  pl.BlockSpec((nrows, LANES), lambda i: (0, 0))],
        out_specs=pl.BlockSpec((BT, LANES), lambda i: (0, 0)),
        compiler_params=pltpu.CompilerParams(dimension_semantics=("arbitrary",)),
    )(x, bias, packed["slab"])

    logits = out[:, :VOCAB].reshape(B, T, VOCAB)
    sequence_output = out[:, REP_COL:REP_COL + EMBED].reshape(B, T, EMBED)

    if output_attentions:
        # TODO(synk): per-layer attention maps are not materialized by the fused kernel.
        return logits, sequence_output, None
    if output_representation:
        return logits, sequence_output
    return logits


# ------------------------- pure-JAX reference (self-check) ----------------------
def _reference_forward(input_ids, params):
    B, T = input_ids.shape
    f32 = jnp.float32
    pad = input_ids == PAD_IDX
    x = params["embed"][input_ids]
    x = jnp.where((input_ids == MASK_IDX)[..., None], 0.0, x)
    src = jnp.maximum(jnp.sum(jnp.logical_not(pad), -1).astype(f32), 1.0)
    mr = jnp.sum(input_ids == MASK_IDX, -1).astype(f32) / src
    x = x * (1.0 - 0.15 * 0.8) / jnp.maximum(1.0 - mr, 1e-6)[:, None, None]
    x = x * (1.0 - pad[..., None].astype(f32))

    inv_freq = 1.0 / (10000.0 ** (jnp.arange(0, DHEAD, 2, dtype=f32) / DHEAD))
    pos = jnp.arange(T, dtype=f32)
    emb = jnp.concatenate([pos[:, None] * inv_freq[None, :]] * 2, -1)   # (T, DHEAD)
    cos, sin = jnp.cos(emb)[None, None], jnp.sin(emb)[None, None]

    def rope(u):                                                        # (B,H,T,D)
        u1, u2 = u[..., :DHEAD // 2], u[..., DHEAD // 2:]
        return u * cos + jnp.concatenate([-u2, u1], -1) * sin

    key_bias = jnp.where(pad, NEG_INF, 0.0)[:, None, None, :]
    for lp in params["layers"]:
        h = _ln(x, lp["ln1_g"], lp["ln1_b"])
        q = (h @ lp["wq"] + lp["bq"]) * DHEAD ** -0.5
        k = h @ lp["wk"] + lp["bk"]
        v = h @ lp["wv"] + lp["bv"]
        sp = lambda u: u.reshape(B, T, NHEAD, DHEAD).transpose(0, 2, 1, 3)
        qh, kh, vh = rope(sp(q)), rope(sp(k)), sp(v)
        s = jnp.einsum("bhqd,bhkd->bhqk", qh, kh) + key_bias
        p = jax.nn.softmax(s, axis=-1)
        ctx = jnp.einsum("bhqk,bhkd->bhqd", p, vh).transpose(0, 2, 1, 3).reshape(B, T, EMBED)
        x = x + ctx @ lp["wo"] + lp["bo"]
        h2 = _ln(x, lp["ln2_g"], lp["ln2_b"])
        x = x + _gelu(h2 @ lp["w1"] + lp["b1"]) @ lp["w2"] + lp["b2"]
    rep = _ln(x, params["emb_ln_g"], params["emb_ln_b"])
    hlm = _ln(_gelu(rep @ params["head_dense_w"] + params["head_dense_b"]),
              params["head_ln_g"], params["head_ln_b"])
    logits = hlm @ params["embed"].T + params["lm_bias"]
    return logits, rep


# ----------------------------------- main ---------------------------------------
if __name__ == "__main__":
    key = jax.random.PRNGKey(0)
    params = init_params(key)

    B, T = 2, 8
    packed = pack_params(params, B, T)     # one-time packing into a single VMEM slab

    tok_key = jax.random.fold_in(key, 123)
    ids = jax.random.randint(tok_key, (B, T), 4, 24)   # standard residue tokens
    ids = ids.at[:, 0].set(0)                          # <cls>
    ids = ids.at[0, T - 1].set(2)                      # <eos>
    ids = ids.at[0, 3].set(MASK_IDX)                   # one <mask>
    ids = ids.at[1, T - 2].set(2)                      # <eos>
    ids = ids.at[1, T - 1].set(PAD_IDX)                # padding
    ids = ids.astype(jnp.int32)

    fwd = jax.jit(lambda i, p: esm2_mlm_forward(i, p, output_representation=True))
    logits, rep = fwd(ids, packed)
    jax.block_until_ready((logits, rep))

    assert logits.shape == (B, T, VOCAB), logits.shape
    assert rep.shape == (B, T, EMBED), rep.shape
    assert bool(jnp.all(jnp.isfinite(logits))) and bool(jnp.all(jnp.isfinite(rep)))

    # Loose-tolerance parity with a pure-JAX reference (approx reciprocal ~1e-4 rel).
    ref_logits, ref_rep = _reference_forward(ids, params)
    assert float(jnp.max(jnp.abs(logits - ref_logits))) < 1e-2
    assert float(jnp.max(jnp.abs(rep - ref_rep))) < 1e-2

    print("KERNEL_OK")
</pallas_src>

<mosaic_0001>
module attributes {stable_mosaic.version = 11 : i64} {
  func.func @kernel(%arg0: i32, %arg1: memref<16x32xf32, #tpu.memory_space<vmem>>, %arg2: memref<16x64xf32, #tpu.memory_space<vmem>>, %arg3: memref<912x128xf32, #tpu.memory_space<vmem>>, %arg4: memref<16x128xf32, #tpu.memory_space<vmem>>) attributes {dimension_semantics = [#tpu.dimension_semantics<arbitrary>], iteration_bounds = array<i64: 1>, scalar_prefetch = 0 : i64, scratch_operands = 0 : i64, tpu.core_type = #tpu.core_type<tc>, window_params = [{pipeline_mode = #tpu.pipeline_mode<synchronous>, transform_indices = @transform_0, window_bounds = array<i64: 16, 32>}, {pipeline_mode = #tpu.pipeline_mode<synchronous>, transform_indices = @transform_1, window_bounds = array<i64: 16, 64>}, {pipeline_mode = #tpu.pipeline_mode<synchronous>, transform_indices = @transform_2, window_bounds = array<i64: 912, 128>}, {pipeline_mode = #tpu.pipeline_mode<synchronous>, transform_indices = @transform_3, window_bounds = array<i64: 16, 128>}]} {
    %c0 = arith.constant 0 : index
    %c0_0 = arith.constant 0 : index
    %0 = vector.load %arg1[%c0, %c0_0] : memref<16x32xf32, #tpu.memory_space<vmem>>, vector<16x32xf32>
    %c0_1 = arith.constant 0 : index
    %c0_2 = arith.constant 0 : index
    %1 = vector.load %arg2[%c0_1, %c0_2] : memref<16x64xf32, #tpu.memory_space<vmem>>, vector<16x64xf32>
    %c720 = arith.constant 720 : index
    %c0_3 = arith.constant 0 : index
    %2 = vector.load %arg3[%c720, %c0_3] : memref<912x128xf32, #tpu.memory_space<vmem>>, vector<16x32xf32>
    %c736 = arith.constant 736 : index
    %c0_4 = arith.constant 0 : index
    %3 = vector.load %arg3[%c736, %c0_4] : memref<912x128xf32, #tpu.memory_space<vmem>>, vector<16x32xf32>
    %c752 = arith.constant 752 : index
    %c0_5 = arith.constant 0 : index
    %4 = vector.load %arg3[%c752, %c0_5] : memref<912x128xf32, #tpu.memory_space<vmem>>, vector<32x32xf32>
    %c784 = arith.constant 784 : index
    %c0_6 = arith.constant 0 : index
    %5 = vector.load %arg3[%c784, %c0_6] : memref<912x128xf32, #tpu.memory_space<vmem>>, vector<64x32xf32>
    %c848 = arith.constant 848 : index
    %c0_7 = arith.constant 0 : index
    %6 = vector.load %arg3[%c848, %c0_7] : memref<912x128xf32, #tpu.memory_space<vmem>>, vector<64x64xf32>
    %c80 = arith.constant 80 : index
    %c0_8 = arith.constant 0 : index
    %7 = vector.load %arg3[%c80, %c0_8] : memref<912x128xf32, #tpu.memory_space<vmem>>, vector<1x32xf32>
    %c88 = arith.constant 88 : index
    %c0_9 = arith.constant 0 : index
    %8 = vector.load %arg3[%c88, %c0_9] : memref<912x128xf32, #tpu.memory_space<vmem>>, vector<1x32xf32>
    %cst = arith.constant dense<0.000000e+00> : vector<16xf32>
    %9 = vector.multi_reduction <add>, %0, %cst [1] : vector<16x32xf32> to vector<16xf32>
    %10 = vector.shape_cast %9 : vector<16xf32> to vector<16x1xf32>
    %cst_10 = arith.constant 3.200000e+01 : f32
    %11 = vector.broadcast %cst_10 : f32 to vector<16x1xf32>
    %12 = arith.divf %10, %11 : vector<16x1xf32>
    %13 = vector.broadcast %12 : vector<16x1xf32> to vector<16x32xf32>
    %14 = arith.subf %0, %13 : vector<16x32xf32>
    %15 = arith.mulf %14, %14 : vector<16x32xf32>
    %cst_11 = arith.constant dense<0.000000e+00> : vector<16xf32>
    %16 = vector.multi_reduction <add>, %15, %cst_11 [1] : vector<16x32xf32> to vector<16xf32>
    %17 = vector.shape_cast %16 : vector<16xf32> to vector<16x1xf32>
    %cst_12 = arith.constant 3.200000e+01 : f32
    %18 = vector.broadcast %cst_12 : f32 to vector<16x1xf32>
    %19 = arith.divf %17, %18 : vector<16x1xf32>
    %cst_13 = arith.constant 9.99999974E-6 : f32
    %20 = vector.broadcast %cst_13 : f32 to vector<16x1xf32>
    %21 = arith.addf %19, %20 : vector<16x1xf32>
    %22 = math.rsqrt %21 : vector<16x1xf32>
    %23 = vector.broadcast %22 : vector<16x1xf32> to vector<16x32xf32>
    %24 = arith.mulf %14, %23 : vector<16x32xf32>
    %25 = vector.broadcast %7 : vector<1x32xf32> to vector<16x32xf32>
    %26 = arith.mulf %24, %25 : vector<16x32xf32>
    %27 = vector.broadcast %8 : vector<1x32xf32> to vector<16x32xf32>
    %28 = arith.addf %26, %27 : vector<16x32xf32>
    %c0_14 = arith.constant 0 : index
    %c0_15 = arith.constant 0 : index
    %29 = vector.load %arg3[%c0_14, %c0_15] : memref<912x128xf32, #tpu.memory_space<vmem>>, vector<32x96xf32>
    %cst_16 = arith.constant dense<0.000000e+00> : vector<16x96xf32>
    %30 = tpu.matmul %28, %29, %cst_16 {dimension_numbers = #tpu.dot_dimension_numbers<[1], [0], [0], [1], [0, 0, 1, 1], [], []>} : vector<16x32xf32>, vector<32x96xf32>, vector<16x96xf32> -> vector<16x96xf32>
    %c32 = arith.constant 32 : index
    %c0_17 = arith.constant 0 : index
    %31 = vector.load %arg3[%c32, %c0_17] : memref<912x128xf32, #tpu.memory_space<vmem>>, vector<1x96xf32>
    %32 = vector.broadcast %31 : vector<1x96xf32> to vector<16x96xf32>
    %33 = arith.addf %30, %32 : vector<16x96xf32>
    %34 = vector.extract_strided_slice %33 {offsets = [0, 0], sizes = [16, 32], strides = [1, 1]} : vector<16x96xf32> to vector<16x32xf32>
    %35 = vector.extract_strided_slice %33 {offsets = [0, 32], sizes = [16, 32], strides = [1, 1]} : vector<16x96xf32> to vector<16x32xf32>
    %36 = vector.extract_strided_slice %33 {offsets = [0, 64], sizes = [16, 32], strides = [1, 1]} : vector<16x96xf32> to vector<16x32xf32>
    %37 = arith.mulf %34, %2 : vector<16x32xf32>
    %cst_18 = arith.constant dense<0.000000e+00> : vector<16x32xf32>
    %38 = tpu.matmul %34, %4, %cst_18 {dimension_numbers = #tpu.dot_dimension_numbers<[1], [0], [0], [1], [0, 0, 1, 1], [], []>} : vector<16x32xf32>, vector<32x32xf32>, vector<16x32xf32> -> vector<16x32xf32>
    %39 = arith.mulf %38, %3 : vector<16x32xf32>
    %40 = arith.addf %37, %39 : vector<16x32xf32>
    %41 = arith.mulf %35, %2 : vector<16x32xf32>
    %cst_19 = arith.constant dense<0.000000e+00> : vector<16x32xf32>
    %42 = tpu.matmul %35, %4, %cst_19 {dimension_numbers = #tpu.dot_dimension_numbers<[1], [0], [0], [1], [0, 0, 1, 1], [], []>} : vector<16x32xf32>, vector<32x32xf32>, vector<16x32xf32> -> vector<16x32xf32>
    %43 = arith.mulf %42, %3 : vector<16x32xf32>
    %44 = arith.addf %41, %43 : vector<16x32xf32>
    %45 = tpu.concatenate %44, %44, %44, %44 in 0 : vector<16x32xf32>, vector<16x32xf32>, vector<16x32xf32>, vector<16x32xf32> -> vector<64x32xf32>
    %46 = arith.mulf %45, %5 : vector<64x32xf32>
    %47 = tpu.concatenate %36, %36, %36, %36 in 0 : vector<16x32xf32>, vector<16x32xf32>, vector<16x32xf32>, vector<16x32xf32> -> vector<64x32xf32>
    %48 = arith.mulf %47, %5 : vector<64x32xf32>
    %cst_20 = arith.constant dense<0.000000e+00> : vector<16x64xf32>
    %49 = tpu.matmul %40, %46, %cst_20 {dimension_numbers = #tpu.dot_dimension_numbers<[1], [1], [0], [0], [0, 0, 1, 0], [], []>} : vector<16x32xf32>, vector<64x32xf32>, vector<16x64xf32> -> vector<16x64xf32>
    %50 = arith.addf %49, %1 : vector<16x64xf32>
    %cst_21 = arith.constant dense<0xFF800000> : vector<16xf32>
    %51 = vector.multi_reduction <maximumf>, %50, %cst_21 [1] : vector<16x64xf32> to vector<16xf32>
    %52 = vector.shape_cast %51 : vector<16xf32> to vector<16x1xf32>
    %53 = vector.broadcast %52 : vector<16x1xf32> to vector<16x64xf32>
    %54 = arith.subf %50, %53 : vector<16x64xf32>
    %55 = math.exp %54 : vector<16x64xf32>
    %cst_22 = arith.constant dense<0.000000e+00> : vector<16x64xf32>
    %56 = tpu.matmul %55, %6, %cst_22 {dimension_numbers = #tpu.dot_dimension_numbers<[1], [0], [0], [1], [0, 0, 1, 1], [], []>} : vector<16x64xf32>, vector<64x64xf32>, vector<16x64xf32> -> vector<16x64xf32>
    %57 = tpu.reciprocal %56 {approx = true} : vector<16x64xf32> -> vector<16x64xf32>
    %58 = arith.mulf %55, %57 : vector<16x64xf32>
    %cst_23 = arith.constant dense<0.000000e+00> : vector<16x32xf32>
    %59 = tpu.matmul %58, %48, %cst_23 {dimension_numbers = #tpu.dot_dimension_numbers<[1], [0], [0], [1], [0, 0, 1, 1], [], []>} : vector<16x64xf32>, vector<64x32xf32>, vector<16x32xf32> -> vector<16x32xf32>
    %c40 = arith.constant 40 : index
    %c0_24 = arith.constant 0 : index
    %60 = vector.load %arg3[%c40, %c0_24] : memref<912x128xf32, #tpu.memory_space<vmem>>, vector<32x32xf32>
    %cst_25 = arith.constant dense<0.000000e+00> : vector<16x32xf32>
    %61 = tpu.matmul %59, %60, %cst_25 {dimension_numbers = #tpu.dot_dimension_numbers<[1], [0], [0], [1], [0, 0, 1, 1], [], []>} : vector<16x32xf32>, vector<32x32xf32>, vector<16x32xf32> -> vector<16x32xf32>
    %62 = arith.addf %0, %61 : vector<16x32xf32>
    %c72 = arith.constant 72 : index
    %c0_26 = arith.constant 0 : index
    %63 = vector.load %arg3[%c72, %c0_26] : memref<912x128xf32, #tpu.memory_space<vmem>>, vector<1x32xf32>
    %64 = vector.broadcast %63 : vector<1x32xf32> to vector<16x32xf32>
    %65 = arith.addf %62, %64 : vector<16x32xf32>
    %c96 = arith.constant 96 : index
    %c0_27 = arith.constant 0 : index
    %66 = vector.load %arg3[%c96, %c0_27] : memref<912x128xf32, #tpu.memory_space<vmem>>, vector<1x32xf32>
    %c104 = arith.constant 104 : index
    %c0_28 = arith.constant 0 : index
    %67 = vector.load %arg3[%c104, %c0_28] : memref<912x128xf32, #tpu.memory_space<vmem>>, vector<1x32xf32>
    %cst_29 = arith.constant dense<0.000000e+00> : vector<16xf32>
    %68 = vector.multi_reduction <add>, %65, %cst_29 [1] : vector<16x32xf32> to vector<16xf32>
    %69 = vector.shape_cast %68 : vector<16xf32> to vector<16x1xf32>
    %cst_30 = arith.constant 3.200000e+01 : f32
    %70 = vector.broadcast %cst_30 : f32 to vector<16x1xf32>
    %71 = arith.divf %69, %70 : vector<16x1xf32>
    %72 = vector.broadcast %71 : vector<16x1xf32> to vector<16x32xf32>
    %73 = arith.subf %65, %72 : vector<16x32xf32>
    %74 = arith.mulf %73, %73 : vector<16x32xf32>
    %cst_31 = arith.constant dense<0.000000e+00> : vector<16xf32>
    %75 = vector.multi_reduction <add>, %74, %cst_31 [1] : vector<16x32xf32> to vector<16xf32>
    %76 = vector.shape_cast %75 : vector<16xf32> to vector<16x1xf32>
    %cst_32 = arith.constant 3.200000e+01 : f32
    %77 = vector.broadcast %cst_32 : f32 to vector<16x1xf32>
    %78 = arith.divf %76, %77 : vector<16x1xf32>
    %cst_33 = arith.constant 9.99999974E-6 : f32
    %79 = vector.broadcast %cst_33 : f32 to vector<16x1xf32>
    %80 = arith.addf %78, %79 : vector<16x1xf32>
    %81 = math.rsqrt %80 : vector<16x1xf32>
    %82 = vector.broadcast %81 : vector<16x1xf32> to vector<16x32xf32>
    %83 = arith.mulf %73, %82 : vector<16x32xf32>
    %84 = vector.broadcast %66 : vector<1x32xf32> to vector<16x32xf32>
    %85 = arith.mulf %83, %84 : vector<16x32xf32>
    %86 = vector.broadcast %67 : vector<1x32xf32> to vector<16x32xf32>
    %87 = arith.addf %85, %86 : vector<16x32xf32>
    %c112 = arith.constant 112 : index
    %c0_34 = arith.constant 0 : index
    %88 = vector.load %arg3[%c112, %c0_34] : memref<912x128xf32, #tpu.memory_space<vmem>>, vector<32x128xf32>
    %cst_35 = arith.constant dense<0.000000e+00> : vector<16x128xf32>
    %89 = tpu.matmul %87, %88, %cst_35 {dimension_numbers = #tpu.dot_dimension_numbers<[1], [0], [0], [1], [0, 0, 1, 1], [], []>} : vector<16x32xf32>, vector<32x128xf32>, vector<16x128xf32> -> vector<16x128xf32>
    %c144 = arith.constant 144 : index
    %c0_36 = arith.constant 0 : index
    %90 = vector.load %arg3[%c144, %c0_36] : memref<912x128xf32, #tpu.memory_space<vmem>>, vector<1x128xf32>
    %91 = vector.broadcast %90 : vector<1x128xf32> to vector<16x128xf32>
    %92 = arith.addf %89, %91 : vector<16x128xf32>
    %cst_37 = arith.constant 5.000000e-01 : f32
    %93 = vector.broadcast %cst_37 : f32 to vector<16x128xf32>
    %94 = arith.mulf %93, %92 : vector<16x128xf32>
    %cst_38 = arith.constant 1.41421354 : f32
    %95 = vector.broadcast %cst_38 : f32 to vector<16x128xf32>
    %96 = arith.divf %92, %95 : vector<16x128xf32>
    %97 = math.erf %96 : vector<16x128xf32>
    %cst_39 = arith.constant 1.000000e+00 : f32
    %98 = vector.broadcast %cst_39 : f32 to vector<16x128xf32>
    %99 = arith.addf %98, %97 : vector<16x128xf32>
    %100 = arith.mulf %94, %99 : vector<16x128xf32>
    %c152 = arith.constant 152 : index
    %c0_40 = arith.constant 0 : index
    %101 = vector.load %arg3[%c152, %c0_40] : memref<912x128xf32, #tpu.memory_space<vmem>>, vector<128x32xf32>
    %cst_41 = arith.constant dense<0.000000e+00> : vector<16x32xf32>
    %102 = tpu.matmul %100, %101, %cst_41 {dimension_numbers = #tpu.dot_dimension_numbers<[1], [0], [0], [1], [0, 0, 1, 1], [], []>} : vector<16x128xf32>, vector<128x32xf32>, vector<16x32xf32> -> vector<16x32xf32>
    %103 = arith.addf %65, %102 : vector<16x32xf32>
    %c280 = arith.constant 280 : index
    %c0_42 = arith.constant 0 : index
    %104 = vector.load %arg3[%c280, %c0_42] : memref<912x128xf32, #tpu.memory_space<vmem>>, vector<1x32xf32>
    %105 = vector.broadcast %104 : vector<1x32xf32> to vector<16x32xf32>
    %106 = arith.addf %103, %105 : vector<16x32xf32>
    %c368 = arith.constant 368 : index
    %c0_43 = arith.constant 0 : index
    %107 = vector.load %arg3[%c368, %c0_43] : memref<912x128xf32, #tpu.memory_space<vmem>>, vector<1x32xf32>
    %c376 = arith.constant 376 : index
    %c0_44 = arith.constant 0 : index
    %108 = vector.load %arg3[%c376, %c0_44] : memref<912x128xf32, #tpu.memory_space<vmem>>, vector<1x32xf32>
    %cst_45 = arith.constant dense<0.000000e+00> : vector<16xf32>
    %109 = vector.multi_reduction <add>, %106, %cst_45 [1] : vector<16x32xf32> to vector<16xf32>
    %110 = vector.shape_cast %109 : vector<16xf32> to vector<16x1xf32>
    %cst_46 = arith.constant 3.200000e+01 : f32
    %111 = vector.broadcast %cst_46 : f32 to vector<16x1xf32>
    %112 = arith.divf %110, %111 : vector<16x1xf32>
    %113 = vector.broadcast %112 : vector<16x1xf32> to vector<16x32xf32>
    %114 = arith.subf %106, %113 : vector<16x32xf32>
    %115 = arith.mulf %114, %114 : vector<16x32xf32>
    %cst_47 = arith.constant dense<0.000000e+00> : vector<16xf32>
    %116 = vector.multi_reduction <add>, %115, %cst_47 [1] : vector<16x32xf32> to vector<16xf32>
    %117 = vector.shape_cast %116 : vector<16xf32> to vector<16x1xf32>
    %cst_48 = arith.constant 3.200000e+01 : f32
    %118 = vector.broadcast %cst_48 : f32 to vector<16x1xf32>
    %119 = arith.divf %117, %118 : vector<16x1xf32>
    %cst_49 = arith.constant 9.99999974E-6 : f32
    %120 = vector.broadcast %cst_49 : f32 to vector<16x1xf32>
    %121 = arith.addf %119, %120 : vector<16x1xf32>
    %122 = math.rsqrt %121 : vector<16x1xf32>
    %123 = vector.broadcast %122 : vector<16x1xf32> to vector<16x32xf32>
    %124 = arith.mulf %114, %123 : vector<16x32xf32>
    %125 = vector.broadcast %107 : vector<1x32xf32> to vector<16x32xf32>
    %126 = arith.mulf %124, %125 : vector<16x32xf32>
    %127 = vector.broadcast %108 : vector<1x32xf32> to vector<16x32xf32>
    %128 = arith.addf %126, %127 : vector<16x32xf32>
    %c288 = arith.constant 288 : index
    %c0_50 = arith.constant 0 : index
    %129 = vector.load %arg3[%c288, %c0_50] : memref<912x128xf32, #tpu.memory_space<vmem>>, vector<32x96xf32>
    %cst_51 = arith.constant dense<0.000000e+00> : vector<16x96xf32>
    %130 = tpu.matmul %128, %129, %cst_51 {dimension_numbers = #tpu.dot_dimension_numbers<[1], [0], [0], [1], [0, 0, 1, 1], [], []>} : vector<16x32xf32>, vector<32x96xf32>, vector<16x96xf32> -> vector<16x96xf32>
    %c320 = arith.constant 320 : index
    %c0_52 = arith.constant 0 : index
    %131 = vector.load %arg3[%c320, %c0_52] : memref<912x128xf32, #tpu.memory_space<vmem>>, vector<1x96xf32>
    %132 = vector.broadcast %131 : vector<1x96xf32> to vector<16x96xf32>
    %133 = arith.addf %130, %132 : vector<16x96xf32>
    %134 = vector.extract_strided_slice %133 {offsets = [0, 0], sizes = [16, 32], strides = [1, 1]} : vector<16x96xf32> to vector<16x32xf32>
    %135 = vector.extract_strided_slice %133 {offsets = [0, 32], sizes = [16, 32], strides = [1, 1]} : vector<16x96xf32> to vector<16x32xf32>
    %136 = vector.extract_strided_slice %133 {offsets = [0, 64], sizes = [16, 32], strides = [1, 1]} : vector<16x96xf32> to vector<16x32xf32>
    %137 = arith.mulf %134, %2 : vector<16x32xf32>
    %cst_53 = arith.constant dense<0.000000e+00> : vector<16x32xf32>
    %138 = tpu.matmul %134, %4, %cst_53 {dimension_numbers = #tpu.dot_dimension_numbers<[1], [0], [0], [1], [0, 0, 1, 1], [], []>} : vector<16x32xf32>, vector<32x32xf32>, vector<16x32xf32> -> vector<16x32xf32>
    %139 = arith.mulf %138, %3 : vector<16x32xf32>
    %140 = arith.addf %137, %139 : vector<16x32xf32>
    %141 = arith.mulf %135, %2 : vector<16x32xf32>
    %cst_54 = arith.constant dense<0.000000e+00> : vector<16x32xf32>
    %142 = tpu.matmul %135, %4, %cst_54 {dimension_numbers = #tpu.dot_dimension_numbers<[1], [0], [0], [1], [0, 0, 1, 1], [], []>} : vector<16x32xf32>, vector<32x32xf32>, vector<16x32xf32> -> vector<16x32xf32>
    %143 = arith.mulf %142, %3 : vector<16x32xf32>
    %144 = arith.addf %141, %143 : vector<16x32xf32>
    %145 = tpu.concatenate %144, %144, %144, %144 in 0 : vector<16x32xf32>, vector<16x32xf32>, vector<16x32xf32>, vector<16x32xf32> -> vector<64x32xf32>
    %146 = arith.mulf %145, %5 : vector<64x32xf32>
    %147 = tpu.concatenate %136, %136, %136, %136 in 0 : vector<16x32xf32>, vector<16x32xf32>, vector<16x32xf32>, vector<16x32xf32> -> vector<64x32xf32>
    %148 = arith.mulf %147, %5 : vector<64x32xf32>
    %cst_55 = arith.constant dense<0.000000e+00> : vector<16x64xf32>
    %149 = tpu.matmul %140, %146, %cst_55 {dimension_numbers = #tpu.dot_dimension_numbers<[1], [1], [0], [0], [0, 0, 1, 0], [], []>} : vector<16x32xf32>, vector<64x32xf32>, vector<16x64xf32> -> vector<16x64xf32>
    %150 = arith.addf %149, %1 : vector<16x64xf32>
    %cst_56 = arith.constant dense<0xFF800000> : vector<16xf32>
    %151 = vector.multi_reduction <maximumf>, %150, %cst_56 [1] : vector<16x64xf32> to vector<16xf32>
    %152 = vector.shape_cast %151 : vector<16xf32> to vector<16x1xf32>
    %153 = vector.broadcast %152 : vector<16x1xf32> to vector<16x64xf32>
    %154 = arith.subf %150, %153 : vector<16x64xf32>
    %155 = math.exp %154 : vector<16x64xf32>
    %cst_57 = arith.constant dense<0.000000e+00> : vector<16x64xf32>
    %156 = tpu.matmul %155, %6, %cst_57 {dimension_numbers = #tpu.dot_dimension_numbers<[1], [0], [0], [1], [0, 0, 1, 1], [], []>} : vector<16x64xf32>, vector<64x64xf32>, vector<16x64xf32> -> vector<16x64xf32>
    %157 = tpu.reciprocal %156 {approx = true} : vector<16x64xf32> -> vector<16x64xf32>
    %158 = arith.mulf %155, %157 : vector<16x64xf32>
    %cst_58 = arith.constant dense<0.000000e+00> : vector<16x32xf32>
    %159 = tpu.matmul %158, %148, %cst_58 {dimension_numbers = #tpu.dot_dimension_numbers<[1], [0], [0], [1], [0, 0, 1, 1], [], []>} : vector<16x64xf32>, vector<64x32xf32>, vector<16x32xf32> -> vector<16x32xf32>
    %c328 = arith.constant 328 : index
    %c0_59 = arith.constant 0 : index
    %160 = vector.load %arg3[%c328, %c0_59] : memref<912x128xf32, #tpu.memory_space<vmem>>, vector<32x32xf32>
    %cst_60 = arith.constant dense<0.000000e+00> : vector<16x32xf32>
    %161 = tpu.matmul %159, %160, %cst_60 {dimension_numbers = #tpu.dot_dimension_numbers<[1], [0], [0], [1], [0, 0, 1, 1], [], []>} : vector<16x32xf32>, vector<32x32xf32>, vector<16x32xf32> -> vector<16x32xf32>
    %162 = arith.addf %106, %161 : vector<16x32xf32>
    %c360 = arith.constant 360 : index
    %c0_61 = arith.constant 0 : index
    %163 = vector.load %arg3[%c360, %c0_61] : memref<912x128xf32, #tpu.memory_space<vmem>>, vector<1x32xf32>
    %164 = vector.broadcast %163 : vector<1x32xf32> to vector<16x32xf32>
    %165 = arith.addf %162, %164 : vector<16x32xf32>
    %c384 = arith.constant 384 : index
    %c0_62 = arith.constant 0 : index
    %166 = vector.load %arg3[%c384, %c0_62] : memref<912x128xf32, #tpu.memory_space<vmem>>, vector<1x32xf32>
    %c392 = arith.constant 392 : index
    %c0_63 = arith.constant 0 : index
    %167 = vector.load %arg3[%c392, %c0_63] : memref<912x128xf32, #tpu.memory_space<vmem>>, vector<1x32xf32>
    %cst_64 = arith.constant dense<0.000000e+00> : vector<16xf32>
    %168 = vector.multi_reduction <add>, %165, %cst_64 [1] : vector<16x32xf32> to vector<16xf32>
    %169 = vector.shape_cast %168 : vector<16xf32> to vector<16x1xf32>
    %cst_65 = arith.constant 3.200000e+01 : f32
    %170 = vector.broadcast %cst_65 : f32 to vector<16x1xf32>
    %171 = arith.divf %169, %170 : vector<16x1xf32>
    %172 = vector.broadcast %171 : vector<16x1xf32> to vector<16x32xf32>
    %173 = arith.subf %165, %172 : vector<16x32xf32>
    %174 = arith.mulf %173, %173 : vector<16x32xf32>
    %cst_66 = arith.constant dense<0.000000e+00> : vector<16xf32>
    %175 = vector.multi_reduction <add>, %174, %cst_66 [1] : vector<16x32xf32> to vector<16xf32>
    %176 = vector.shape_cast %175 : vector<16xf32> to vector<16x1xf32>
    %cst_67 = arith.constant 3.200000e+01 : f32
    %177 = vector.broadcast %cst_67 : f32 to vector<16x1xf32>
    %178 = arith.divf %176, %177 : vector<16x1xf32>
    %cst_68 = arith.constant 9.99999974E-6 : f32
    %179 = vector.broadcast %cst_68 : f32 to vector<16x1xf32>
    %180 = arith.addf %178, %179 : vector<16x1xf32>
    %181 = math.rsqrt %180 : vector<16x1xf32>
    %182 = vector.broadcast %181 : vector<16x1xf32> to vector<16x32xf32>
    %183 = arith.mulf %173, %182 : vector<16x32xf32>
    %184 = vector.broadcast %166 : vector<1x32xf32> to vector<16x32xf32>
    %185 = arith.mulf %183, %184 : vector<16x32xf32>
    %186 = vector.broadcast %167 : vector<1x32xf32> to vector<16x32xf32>
    %187 = arith.addf %185, %186 : vector<16x32xf32>
    %c400 = arith.constant 400 : index
    %c0_69 = arith.constant 0 : index
    %188 = vector.load %arg3[%c400, %c0_69] : memref<912x128xf32, #tpu.memory_space<vmem>>, vector<32x128xf32>
    %cst_70 = arith.constant dense<0.000000e+00> : vector<16x128xf32>
    %189 = tpu.matmul %187, %188, %cst_70 {dimension_numbers = #tpu.dot_dimension_numbers<[1], [0], [0], [1], [0, 0, 1, 1], [], []>} : vector<16x32xf32>, vector<32x128xf32>, vector<16x128xf32> -> vector<16x128xf32>
    %c432 = arith.constant 432 : index
    %c0_71 = arith.constant 0 : index
    %190 = vector.load %arg3[%c432, %c0_71] : memref<912x128xf32, #tpu.memory_space<vmem>>, vector<1x128xf32>
    %191 = vector.broadcast %190 : vector<1x128xf32> to vector<16x128xf32>
    %192 = arith.addf %189, %191 : vector<16x128xf32>
    %cst_72 = arith.constant 5.000000e-01 : f32
    %193 = vector.broadcast %cst_72 : f32 to vector<16x128xf32>
    %194 = arith.mulf %193, %192 : vector<16x128xf32>
    %cst_73 = arith.constant 1.41421354 : f32
    %195 = vector.broadcast %cst_73 : f32 to vector<16x128xf32>
    %196 = arith.divf %192, %195 : vector<16x128xf32>
    %197 = math.erf %196 : vector<16x128xf32>
    %cst_74 = arith.constant 1.000000e+00 : f32
    %198 = vector.broadcast %cst_74 : f32 to vector<16x128xf32>
    %199 = arith.addf %198, %197 : vector<16x128xf32>
    %200 = arith.mulf %194, %199 : vector<16x128xf32>
    %c440 = arith.constant 440 : index
    %c0_75 = arith.constant 0 : index
    %201 = vector.load %arg3[%c440, %c0_75] : memref<912x128xf32, #tpu.memory_space<vmem>>, vector<128x32xf32>
    %cst_76 = arith.constant dense<0.000000e+00> : vector<16x32xf32>
    %202 = tpu.matmul %200, %201, %cst_76 {dimension_numbers = #tpu.dot_dimension_numbers<[1], [0], [0], [1], [0, 0, 1, 1], [], []>} : vector<16x128xf32>, vector<128x32xf32>, vector<16x32xf32> -> vector<16x32xf32>
    %203 = arith.addf %165, %202 : vector<16x32xf32>
    %c568 = arith.constant 568 : index
    %c0_77 = arith.constant 0 : index
    %204 = vector.load %arg3[%c568, %c0_77] : memref<912x128xf32, #tpu.memory_space<vmem>>, vector<1x32xf32>
    %205 = vector.broadcast %204 : vector<1x32xf32> to vector<16x32xf32>
    %206 = arith.addf %203, %205 : vector<16x32xf32>
    %c576 = arith.constant 576 : index
    %c0_78 = arith.constant 0 : index
    %207 = vector.load %arg3[%c576, %c0_78] : memref<912x128xf32, #tpu.memory_space<vmem>>, vector<1x32xf32>
    %c584 = arith.constant 584 : index
    %c0_79 = arith.constant 0 : index
    %208 = vector.load %arg3[%c584, %c0_79] : memref<912x128xf32, #tpu.memory_space<vmem>>, vector<1x32xf32>
    %cst_80 = arith.constant dense<0.000000e+00> : vector<16xf32>
    %209 = vector.multi_reduction <add>, %206, %cst_80 [1] : vector<16x32xf32> to vector<16xf32>
    %210 = vector.shape_cast %209 : vector<16xf32> to vector<16x1xf32>
    %cst_81 = arith.constant 3.200000e+01 : f32
    %211 = vector.broadcast %cst_81 : f32 to vector<16x1xf32>
    %212 = arith.divf %210, %211 : vector<16x1xf32>
    %213 = vector.broadcast %212 : vector<16x1xf32> to vector<16x32xf32>
    %214 = arith.subf %206, %213 : vector<16x32xf32>
    %215 = arith.mulf %214, %214 : vector<16x32xf32>
    %cst_82 = arith.constant dense<0.000000e+00> : vector<16xf32>
    %216 = vector.multi_reduction <add>, %215, %cst_82 [1] : vector<16x32xf32> to vector<16xf32>
    %217 = vector.shape_cast %216 : vector<16xf32> to vector<16x1xf32>
    %cst_83 = arith.constant 3.200000e+01 : f32
    %218 = vector.broadcast %cst_83 : f32 to vector<16x1xf32>
    %219 = arith.divf %217, %218 : vector<16x1xf32>
    %cst_84 = arith.constant 9.99999974E-6 : f32
    %220 = vector.broadcast %cst_84 : f32 to vector<16x1xf32>
    %221 = arith.addf %219, %220 : vector<16x1xf32>
    %222 = math.rsqrt %221 : vector<16x1xf32>
    %223 = vector.broadcast %222 : vector<16x1xf32> to vector<16x32xf32>
    %224 = arith.mulf %214, %223 : vector<16x32xf32>
    %225 = vector.broadcast %207 : vector<1x32xf32> to vector<16x32xf32>
    %226 = arith.mulf %224, %225 : vector<16x32xf32>
    %227 = vector.broadcast %208 : vector<1x32xf32> to vector<16x32xf32>
    %228 = arith.addf %226, %227 : vector<16x32xf32>
    %c592 = arith.constant 592 : index
    %c0_85 = arith.constant 0 : index
    %229 = vector.load %arg3[%c592, %c0_85] : memref<912x128xf32, #tpu.memory_space<vmem>>, vector<32x32xf32>
    %cst_86 = arith.constant dense<0.000000e+00> : vector<16x32xf32>
    %230 = tpu.matmul %228, %229, %cst_86 {dimension_numbers = #tpu.dot_dimension_numbers<[1], [0], [0], [1], [0, 0, 1, 1], [], []>} : vector<16x32xf32>, vector<32x32xf32>, vector<16x32xf32> -> vector<16x32xf32>
    %c624 = arith.constant 624 : index
    %c0_87 = arith.constant 0 : index
    %231 = vector.load %arg3[%c624, %c0_87] : memref<912x128xf32, #tpu.memory_space<vmem>>, vector<1x32xf32>
    %232 = vector.broadcast %231 : vector<1x32xf32> to vector<16x32xf32>
    %233 = arith.addf %230, %232 : vector<16x32xf32>
    %cst_88 = arith.constant 5.000000e-01 : f32
    %234 = vector.broadcast %cst_88 : f32 to vector<16x32xf32>
    %235 = arith.mulf %234, %233 : vector<16x32xf32>
    %cst_89 = arith.constant 1.41421354 : f32
    %236 = vector.broadcast %cst_89 : f32 to vector<16x32xf32>
    %237 = arith.divf %233, %236 : vector<16x32xf32>
    %238 = math.erf %237 : vector<16x32xf32>
    %cst_90 = arith.constant 1.000000e+00 : f32
    %239 = vector.broadcast %cst_90 : f32 to vector<16x32xf32>
    %240 = arith.addf %239, %238 : vector<16x32xf32>
    %241 = arith.mulf %235, %240 : vector<16x32xf32>
    %c632 = arith.constant 632 : index
    %c0_91 = arith.constant 0 : index
    %242 = vector.load %arg3[%c632, %c0_91] : memref<912x128xf32, #tpu.memory_space<vmem>>, vector<1x32xf32>
    %c640 = arith.constant 640 : index
    %c0_92 = arith.constant 0 : index
    %243 = vector.load %arg3[%c640, %c0_92] : memref<912x128xf32, #tpu.memory_space<vmem>>, vector<1x32xf32>
    %cst_93 = arith.constant dense<0.000000e+00> : vector<16xf32>
    %244 = vector.multi_reduction <add>, %241, %cst_93 [1] : vector<16x32xf32> to vector<16xf32>
    %245 = vector.shape_cast %244 : vector<16xf32> to vector<16x1xf32>
    %cst_94 = arith.constant 3.200000e+01 : f32
    %246 = vector.broadcast %cst_94 : f32 to vector<16x1xf32>
    %247 = arith.divf %245, %246 : vector<16x1xf32>
    %248 = vector.broadcast %247 : vector<16x1xf32> to vector<16x32xf32>
    %249 = arith.subf %241, %248 : vector<16x32xf32>
    %250 = arith.mulf %249, %249 : vector<16x32xf32>
    %cst_95 = arith.constant dense<0.000000e+00> : vector<16xf32>
    %251 = vector.multi_reduction <add>, %250, %cst_95 [1] : vector<16x32xf32> to vector<16xf32>
    %252 = vector.shape_cast %251 : vector<16xf32> to vector<16x1xf32>
    %cst_96 = arith.constant 3.200000e+01 : f32
    %253 = vector.broadcast %cst_96 : f32 to vector<16x1xf32>
    %254 = arith.divf %252, %253 : vector<16x1xf32>
    %cst_97 = arith.constant 9.99999974E-6 : f32
    %255 = vector.broadcast %cst_97 : f32 to vector<16x1xf32>
    %256 = arith.addf %254, %255 : vector<16x1xf32>
    %257 = math.rsqrt %256 : vector<16x1xf32>
    %258 = vector.broadcast %257 : vector<16x1xf32> to vector<16x32xf32>
    %259 = arith.mulf %249, %258 : vector<16x32xf32>
    %260 = vector.broadcast %242 : vector<1x32xf32> to vector<16x32xf32>
    %261 = arith.mulf %259, %260 : vector<16x32xf32>
    %262 = vector.broadcast %243 : vector<1x32xf32> to vector<16x32xf32>
    %263 = arith.addf %261, %262 : vector<16x32xf32>
    %c648 = arith.constant 648 : index
    %c0_98 = arith.constant 0 : index
    %264 = vector.load %arg3[%c648, %c0_98] : memref<912x128xf32, #tpu.memory_space<vmem>>, vector<32x128xf32>
    %cst_99 = arith.constant dense<0.000000e+00> : vector<16x128xf32>
    %265 = tpu.matmul %263, %264, %cst_99 {dimension_numbers = #tpu.dot_dimension_numbers<[1], [0], [0], [1], [0, 0, 1, 1], [], []>} : vector<16x32xf32>, vector<32x128xf32>, vector<16x128xf32> -> vector<16x128xf32>
    %c680 = arith.constant 680 : index
    %c0_100 = arith.constant 0 : index
    %266 = vector.load %arg3[%c680, %c0_100] : memref<912x128xf32, #tpu.memory_space<vmem>>, vector<1x128xf32>
    %267 = vector.broadcast %266 : vector<1x128xf32> to vector<16x128xf32>
    %268 = arith.addf %265, %267 : vector<16x128xf32>
    %c688 = arith.constant 688 : index
    %c0_101 = arith.constant 0 : index
    %269 = vector.load %arg3[%c688, %c0_101] : memref<912x128xf32, #tpu.memory_space<vmem>>, vector<32x128xf32>
    %cst_102 = arith.constant dense<0.000000e+00> : vector<16x128xf32>
    %270 = tpu.matmul %228, %269, %cst_102 {dimension_numbers = #tpu.dot_dimension_numbers<[1], [0], [0], [1], [0, 0, 1, 1], [], []>} : vector<16x32xf32>, vector<32x128xf32>, vector<16x128xf32> -> vector<16x128xf32>
    %271 = arith.addf %268, %270 : vector<16x128xf32>
    %c0_103 = arith.constant 0 : index
    %c0_104 = arith.constant 0 : index
    %272 = vector.load %arg4[%c0_103, %c0_104] : memref<16x128xf32, #tpu.memory_space<vmem>>, vector<16x128xf32>
    tpu.vector_store %arg4[%c0_103, %c0_104], %271 {strides = array<i32>} : memref<16x128xf32, #tpu.memory_space<vmem>>, vector<16x128xf32>,
    return
  }
  func.func @transform_0(%arg0: i32) -> (i32, i32) {
    %c0_i32 = arith.constant 0 : i32
    %c0_i32_0 = arith.constant 0 : i32
    %c0_i32_1 = arith.constant 0 : i32
    return %c0_i32, %c0_i32_0 : i32, i32
  }
  func.func @transform_1(%arg0: i32) -> (i32, i32) {
    %c0_i32 = arith.constant 0 : i32
    %c0_i32_0 = arith.constant 0 : i32
    %c0_i32_1 = arith.constant 0 : i32
    return %c0_i32, %c0_i32_0 : i32, i32
  }
  func.func @transform_2(%arg0: i32) -> (i32, i32) {
    %c0_i32 = arith.constant 0 : i32
    %c0_i32_0 = arith.constant 0 : i32
    %c0_i32_1 = arith.constant 0 : i32
    return %c0_i32, %c0_i32_0 : i32, i32
  }
  func.func @transform_3(%arg0: i32) -> (i32, i32) {
    %c0_i32 = arith.constant 0 : i32
    %c0_i32_0 = arith.constant 0 : i32
    %c0_i32_1 = arith.constant 0 : i32
    return %c0_i32, %c0_i32_0 : i32, i32
  }
}

</mosaic_0001>

<bundles_post_ra>
// kernel: tile.9
= control target key start
LH: loop header
LB: loop body
LE: loop exit
PB: predicated region body
PF: predicated region fallthrough
CT: control target
= control target key end

     0   :  { %vm83_vm0 = vcmask 1047556   ;;  %vm85_vm1 = vcmask 130048   ;;  %s196_s9 = smov 48   ;;  %s197_s14 = smov 16   ;;  %vm104_vm2 = vcmask 523648   ;;  %vm125_vm3 = vcmask 392448   ;;  %s290_s0 = inlined_call_operand.vmem [shape: f32[16,4,16], index: 0, kind: input, shape index: {}]   ;;  %s291_s1 = inlined_call_operand.vmem [shape: f32[16,64], index: 1, kind: output, shape index: {}]  }
   0x1   :  { %v181_v0 = vld [vmem:[%s290_s0 + $0x1c] sm:$0xf]  ;;  %v182_v1 = vld [vmem:[%s290_s0 + $0x18] sm:$0xf]  ;;  %v183_v2 = vld [vmem:[%s290_s0 + $0x14] sm:$0xf] }
   0x2   :  { %49 = vst [vmem:[#allocation0 + $0x38] sm:$0xf] %v181_v0  ;;  %54 = vst [vmem:[#allocation0 + $0x30] sm:$0xf] %v182_v1  ;;  %v184_v3 = vld [vmem:[%s290_s0 + $0x10] sm:$0xf] }
   0x3   :  { %59 = vst [vmem:[#allocation0 + $0x28] sm:$0xf] %v183_v2  ;;  %v185_v4 = vld [vmem:[%s290_s0 + $0xc] sm:$0xf]  ;;  %v186_v5 = vld [vmem:[%s290_s0 + $0x8] sm:$0xf] }
   0x4   :  { %64 = vst [vmem:[#allocation0 + $0x20] sm:$0xf] %v184_v3  ;;  %69 = vst [vmem:[#allocation0 + $0x18] sm:$0xf] %v185_v4  ;;  %v187_v6 = vld [vmem:[%s290_s0 + $0x4] sm:$0xf] }
   0x5   :  { %74 = vst [vmem:[#allocation0 + $0x10] sm:$0xf] %v186_v5  ;;  %v79_v7 = vld [vmem:[%s290_s0] sm:$0xf]  ;;  %78 = vst [vmem:[#allocation0 + $0x8] sm:$0xf] %v187_v6 }
   0x6   :  { %80 = vst [vmem:[#allocation0] sm:$0xf] %v79_v7  ;;  %v173_v8 = vld [vmem:[%s290_s0 + $0x3c] sm:$0xf]  ;;  %v174_v9 = vld [vmem:[%s290_s0 + $0x38] sm:$0xf] }
   0x7   :  { %9 = vst [vmem:[#allocation0 + $0x78] sm:$0xf] %v173_v8  ;;  %14 = vst [vmem:[#allocation0 + $0x70] sm:$0xf] %v174_v9  ;;  %v175_v10 = vld [vmem:[%s290_s0 + $0x34] sm:$0xf] }
   0x8   :  { %v176_v11 = vld [vmem:[%s290_s0 + $0x30] sm:$0xf]  ;;  %v177_v12 = vld [vmem:[%s290_s0 + $0x2c] sm:$0xf]  ;;  %19 = vst [vmem:[#allocation0 + $0x68] sm:$0xf] %v175_v10 }
   0x9   :  { %24 = vst [vmem:[#allocation0 + $0x60] sm:$0xf] %v176_v11  ;;  %29 = vst [vmem:[#allocation0 + $0x58] sm:$0xf] %v177_v12  ;;  %v178_v13 = vld [vmem:[%s290_s0 + $0x28] sm:$0xf] }
   0xa   :  { %v179_v14 = vld [vmem:[%s290_s0 + $0x24] sm:$0xf]  ;;  %v180_v15 = vld [vmem:[%s290_s0 + $0x20] sm:$0xf]  ;;  %34 = vst [vmem:[#allocation0 + $0x50] sm:$0xf] %v178_v13 }
   0xb   :  { %39 = vst [vmem:[#allocation0 + $0x48] sm:$0xf] %v179_v14  ;;  %44 = vst [vmem:[#allocation0 + $0x40] sm:$0xf] %v180_v15  ;;  %s195_s0 = smov 32   ;;  %vm146_vm4 = vcmask 261248  }
   0xc   :  { %v120_v16 = vld [vmem:[#allocation0 + $0x2] ss:$8 sm:$0xf0]   ;;  %v99_v17 = vld [vmem:[#allocation0 + $0x3] ss:$8 sm:$0xf0]  }
   0xd   :  { %v118_v18 = vld [vmem:[#allocation0 + $0x2] ss:$8 sm:$0xf]   ;;  %v97_v19 = vld [vmem:[#allocation0 + $0x3] ss:$8 sm:$0xf]  }
   0xe   :  { %v122_v20 = vsel %vm83_vm0, %v120_v16, %v118_v18  ;;  %v101_v21 = vsel %vm83_vm0, %v99_v17, %v97_v19  ;;  %v139_v24 = vld [vmem:[#allocation0 + $0x1] ss:$8 sm:$0xf]   ;;  %v81_v32 = vld [vmem:[#allocation0] ss:$8 sm:$0xf]  }
   0xf   :  { %123 = vrot.lane.b32.xlu1 %v122_v20, %s195_s0  ;;  %102 = vrot.lane.b32.xlu0 %v101_v21, %s196_s9  ;;  %v141_v25 = vld [vmem:[#allocation0 + $0x1] ss:$8 sm:$0xf0]   ;;  %v82_v33 = vld [vmem:[#allocation0] ss:$8 sm:$0xf0]  }
  0x10   :  { %v130_v22 = vld [vmem:[#allocation0 + $0x42] ss:$8 sm:$0xf0]   ;;  %v109_v23 = vld [vmem:[#allocation0 + $0x43] ss:$8 sm:$0xf0]   ;;  %v84_v34 = vsel %vm83_vm0, %v82_v33, %v81_v32  ;;  %v143_v38 = vsel %vm83_vm0, %v141_v25, %v139_v24 }
  0x11   :  { %v151_v31 = vld [vmem:[#allocation0 + $0x41] ss:$8 sm:$0xf0]   ;;  %v90_v36 = vld [vmem:[#allocation0 + $0x40] ss:$8 sm:$0xf0]  }
  0x12   :  { %v128_v26 = vld [vmem:[#allocation0 + $0x42] ss:$8 sm:$0xf]   ;;  %v107_v27 = vld [vmem:[#allocation0 + $0x43] ss:$8 sm:$0xf]  }
  0x13   :  { %v132_v28 = vsel %vm83_vm0, %v130_v22, %v128_v26  ;;  %v111_v29 = vsel %vm83_vm0, %v109_v23, %v107_v27  ;;  %v149_v30 = vld [vmem:[#allocation0 + $0x41] ss:$8 sm:$0xf]   ;;  %v88_v35 = vld [vmem:[#allocation0 + $0x40] ss:$8 sm:$0xf]  }
  0x14   :  { %133 = vrot.lane.b32.xlu1 %v132_v28, %s195_s0  ;;  %112 = vrot.lane.b32.xlu0 %v111_v29, %s196_s9  ;;  %v153_v37 = vsel %vm83_vm0, %v151_v31, %v149_v30  ;;  %86 = vst.msk [vmem:[%s291_s1] sm:$0xff] %vm85_vm1, %v84_v34   ;;  %v92_v39 = vsel %vm83_vm0, %v90_v36, %v88_v35 }
  0x15   :  { %188 = vst.msk [vmem:[%s291_s1 + $0x8] sm:$0xff] %vm85_vm1, %v92_v39  }
  0x18   :  { %154 = vrot.lane.b32.xlu1 %v153_v37, %s197_s14  ;;  %144 = vrot.lane.b32.xlu0 %v143_v38, %s197_s14 }
  0x81   :  { %v124_v40 = vpop.permute.xlu1 %123   ;;  %v103_v41 = vpop.permute.xlu0 %102  }
  0x82   :  { %105 = vst.msk [vmem:[%s291_s1] sm:$0xff] %vm104_vm2, %v103_v41  }
  0x83   :  { %126 = vst.msk [vmem:[%s291_s1] sm:$0xff] %vm125_vm3, %v124_v40  }
  0x86   :  { %v134_v42 = vpop.permute.xlu1 %133   ;;  %v113_v43 = vpop.permute.xlu0 %112  }
  0x87   :  { %189 = vst.msk [vmem:[%s291_s1 + $0x8] sm:$0xff] %vm104_vm2, %v113_v43  }
  0x88   :  { %190 = vst.msk [vmem:[%s291_s1 + $0x8] sm:$0xff] %vm125_vm3, %v134_v42  }
  0x8a   :  { %v155_v44 = vpop.permute.xlu1 %154   ;;  %v145_v45 = vpop.permute.xlu0 %144  }
  0x8b   :  { %191 = vst.msk [vmem:[%s291_s1 + $0x8] sm:$0xff] %vm146_vm4, %v155_v44   ;;  %147 = vst.msk [vmem:[%s291_s1] sm:$0xff] %vm146_vm4, %v145_v45  }

// kernel: _lambda_.1
= control target key start
LH: loop header
LB: loop body
LE: loop exit
PB: predicated region body
PF: predicated region fallthrough
CT: control target
= control target key end

     0   :  { %8 = vsyncpa [#allocation3], 0  ;;  %s3129_s12 = smov [#allocation2]   ;;  %s3645_s0 = inlined_call_operand.vmem [shape: f32[16,32], index: 0, kind: input, shape index: {}]   ;;  %s3646_s1 = inlined_call_operand.vmem [shape: f32[16,64], index: 1, kind: input, shape index: {}]   ;;  %s3647_s2 = inlined_call_operand.hbm [shape: f32[912,128], index: 2, kind: input, shape index: {}]   ;;  %s3648_s3 = inlined_call_operand.vmem [shape: f32[16,128], index: 3, kind: output, shape index: {}]  }
   0x1   :  { %s18_s13 = sshll.u32 %s3129_s12, 4  ;;  %s19_s13 = int_to_ptr.vmem [resolvable:$true] %s18_s13 }
   0x2   :  { %s3115_s14 = scalar_lea.vmem %s19_s13, 14592  ;;  %p3120_p1 = scmp.lt.s32.totalorder %s19_s13, %s19_s13 }
   0x3   :  { %p3116_p0 = scmp.ne.s32.totalorder %s19_s13, %s3115_s14  ;;  %p3121_p2 = scmp.lt.s32.totalorder %s3115_s14, %s3115_s14 }
   0x5   :  { %p3122_p3 = por %p3121_p2, %p3120_p1 }
   0x7   :  { %p3123_p4 = pnand %p3122_p3, %p3116_p0 }
   0x9   :  { %3126 = shalt.err (!%p3123_p4)
}
   0xa   :  { %s3130_s15 = smov 128   ;;  %s3131_s16 = smov 8  }
   0xb   :  { %24 = dma.hbm_to_vmem [thread:$0]  %s3647_s2, 14592, %s19_s13, [#allocation3], %s3130_s15, %s3130_s15, %s3131_s16  }
   0xc   :  { %3127 = dma.done.wait [#allocation3], 14592  }
   0xd   :  { %3128 = vsyncadd [#allocation3], 4294952704  ;;  %vm58_vm0 = vcmask 261120   ;;  %v3161_v0 = vld [vmem:[%s3645_s0] sm:$0xff]  ;;  %v3166_v1 = vld [vmem:[%s3645_s0 + $0x8] sm:$0xff]  ;;  %s3132_s0 = smov 96  }
   0xe   :  { %v59_v2 = vsel %vm58_vm0, %v3161_v0, 0.0  ;;  %v62_v3 = vsel %vm58_vm0, %v3166_v1, 0.0  ;;  %v101_v14 = vld [vmem:[#allocation2 + $0x18] sm:$0xff]  ;;  %v100_v15 = vld [vmem:[#allocation2 + $0x10] sm:$0xff]  ;;  %v99_v16 = vld [vmem:[#allocation2 + $0x8] sm:$0xff]  ;;  %s3133_s2 = smov 32  }
   0xf   :  { %60 = vadd.xlane.f32.xlu0 %v59_v2  ;;  %2722 = vmatprep.subr.mxu0 %v101_v14  ;;  %v98_v17 = vld [vmem:[#allocation2] sm:$0xff]  ;;  %v3176_v18 = vld [vmem:[#allocation2 + $0x308] sm:$0xff]  ;;  %v2472_v26 = vld [vmem:[#allocation2 + $0x50] ss:$0 sm:$0xff]  ;;  %vm573_vm1 = vcmask 523264  }
  0x10   :  { %2723 = vmatpush3.msra.mxu0 %v101_v14  ;;  %2733 = vmatprep.subr.mxu1 %v3176_v18  ;;  %v2473_v28 = vld [vmem:[#allocation2 + $0x58] ss:$0 sm:$0xff]  ;;  %v3184_v35 = vld [vmem:[#allocation2 + $0x300] sm:$0xff]  ;;  %v3195_v37 = vld [vmem:[#allocation2 + $0x2f0] sm:$0xff] }
  0x11   :  { %2724 = vmatprep.subr.mxu0 %v100_v15  ;;  %2734 = vmatpush3.msra.mxu1 %v3176_v18  ;;  %v3189_v36 = vld [vmem:[#allocation2 + $0x2f8] sm:$0xff]  ;;  %v2474_v38 = vld [vmem:[#allocation2 + $0x20] ss:$0 sm:$0xff]  ;;  %v3218_v44 = vld [vmem:[#allocation2 + $0x2d0] sm:$0xff] }
  0x12   :  { %2725 = vmatpush3.msra.mxu0 %v100_v15  ;;  %2735 = vmatprep.subr.mxu1 %v3184_v35  ;;  %v3214_v43 = vld [vmem:[#allocation2 + $0x2d8] sm:$0xff]  ;;  %v3226_v48 = vld [vmem:[#allocation2 + $0x2e0] sm:$0xff]  ;;  %v3232_v53 = vld [vmem:[#allocation2 + $0x2e8] sm:$0xff] }
  0x13   :  { %63 = vadd.xlane.f32.xlu0 %v62_v3  ;;  %2726 = vmatprep.subr.mxu0 %v99_v16  ;;  %v3237_v58 = vld [vmem:[#allocation2 + $0x348] sm:$0xff]  ;;  %v3240_v59 = vld [vmem:[#allocation2 + $0x338] sm:$0xff]  ;;  %v3244_v60 = vld [vmem:[#allocation2 + $0x340] sm:$0xff] }
  0x14   :  { %2727 = vmatpush3.msra.mxu0 %v99_v16  ;;  %2736 = vmatpush3.msra.mxu1 %v3184_v35  ;;  %v3248_v61 = vld [vmem:[#allocation2 + $0x328] sm:$0xff]  ;;  %v3252_v62 = vld [vmem:[#allocation2 + $0x330] sm:$0xff]  ;;  %v3256_v63 = vld [vmem:[#allocation2 + $0x318] sm:$0xff] }
  0x15   :  { %2728 = vmatprep.subr.mxu0 %v98_v17  ;;  %2737 = vmatprep.subr.mxu1 %v3189_v36  ;;  %v3260_v2 = vld [vmem:[#allocation2 + $0x320] sm:$0xff]  ;;  %v3266_v3 = vld [vmem:[#allocation2 + $0x310] sm:$0xff] }
  0x16   :  { %2729 = vmatpush3.msra.mxu0 %v98_v17  ;;  %2738 = vmatpush3.msra.mxu1 %v3189_v36 }
  0x17   :  { %2744 = vmatprep.subr.mxu0 %v3176_v18  ;;  %2739 = vmatprep.subr.mxu1 %v3195_v37 }
  0x18   :  { %2740 = vmatpush3.msra.mxu1 %v3195_v37 }
  0x98   :  { %v61_v4 = vpop.xlane.xlu0 %60 }
  0x99   :  { %v66_v5 = vmul.f32 0.03125, %v61_v4 }
  0x9b   :  { %v68_v6 = vsub.f32 %v3161_v0, %v66_v5 }
  0x9c   :  { %v64_v7 = vpop.xlane.xlu0 %63 }
  0x9d   :  { %v67_v8 = vmul.f32 0.03125, %v64_v7  ;;  %v70_v9 = vmul.f32 %v68_v6, %v68_v6 }
  0x9f   :  { %v69_v10 = vsub.f32 %v3166_v1, %v67_v8  ;;  %v72_v11 = vsel %vm58_vm0, %v70_v9, 0.0 }
  0xa0   :  { %73 = vadd.xlane.f32.xlu1 %v72_v11 }
  0xa1   :  { %v71_v12 = vmul.f32 %v69_v10, %v69_v10 }
  0xa3   :  { %v75_v13 = vsel %vm58_vm0, %v71_v12, 0.0 }
  0xa4   :  { %76 = vadd.xlane.f32.xlu1 %v75_v13 }
 0x129   :  { %v74_v19 = vpop.xlane.xlu1 %73 }
 0x12a   :  { %v78_v20 = vmul.f32 0.03125, %v74_v19 }
 0x12c   :  { %v80_v21 = vadd.f32 1e-05, %v78_v20 }
 0x12d   :  { %v77_v22 = vpop.xlane.xlu1 %76 }
 0x12e   :  { %3055 = vrsqrt.f32 %v80_v21  ;;  %v79_v23 = vmul.f32 0.03125, %v77_v22 }
 0x130   :  { %v81_v24 = vadd.f32 1e-05, %v79_v23 }
 0x132   :  { %3057 = vrsqrt.f32 %v81_v24 }
 0x13b   :  { %v3056_v25 = vpop.eup %3055 }
 0x13c   :  { %v84_v27 = vmul.f32 %v3056_v25, %v68_v6 }
 0x13e   :  { %v90_v29 = vmul.f32 %v2472_v26, %v84_v27 }
 0x13f   :  { %v3058_v30 = vpop.eup %3057 }
 0x140   :  { %v85_v31 = vmul.f32 %v3058_v30, %v69_v10  ;;  %v96_v32 = vadd.f32 %v2473_v28, %v90_v29 }
 0x142   :  { %v91_v33 = vmul.f32 %v2472_v26, %v85_v31  ;;  %2730 = vmatprep.mubr.msk.f32.mxu0 %vm58_vm0, %v96_v32 }
 0x144   :  { %v97_v34 = vadd.f32 %v2473_v28, %v91_v33 }
 0x146   :  { %2731 = vmatmul.mubr.msk.f32.vlgmr.msra.gmra.mxu0 %vm58_vm0, %v97_v34 }
 0x147   :  { %2745 = vmatpush3.msra.mxu0 %v3176_v18 }
 0x148   :  { %2746 = vmatprep.subr.mxu0 %v3184_v35 }
 0x149   :  { %2747 = vmatpush3.msra.mxu0 %v3184_v35 }
 0x14a   :  { %2748 = vmatprep.subr.mxu0 %v3189_v36 }
 0x14b   :  { %2749 = vmatpush3.msra.mxu0 %v3189_v36 }
 0x14c   :  { %2750 = vmatprep.subr.mxu0 %v3195_v37 }
 0x14d   :  { %2751 = vmatpush3.msra.mxu0 %v3195_v37 }
 0x206   :  { %v2732_v39 = vpop.f32.mrf.mxu0 }
 0x207   :  { %v3202_v40 = vadd.f32 %v2732_v39, %v2474_v38 }
 0x208   :  { %v179_v41 = vpop.f32.mrf.mxu0 }
 0x209   :  { %v3204_v42 = vadd.f32 %v2474_v38, %v179_v41  ;;  %287 = vrot.lane.b32.xlu1 %v3202_v40, %s3132_s0 }
 0x20b   :  { %285 = vrot.lane.b32.xlu0 %v3204_v42, %s3132_s0  ;;  %2741 = vmatprep.mubr.msk.f32.mxu1 %vm58_vm0, %v3204_v42  ;;  %v188_v50 = vmul.f32 %v3204_v42, %v3218_v44 }
 0x20c   :  { %2742 = vmatmul.mubr.msk.f32.vlgmr.msra.gmra.mxu1 %vm58_vm0, %v3202_v40 }
 0x20d   :  { %279 = vrot.lane.b32.xlu1 %v3214_v43, %s3133_s2 }
 0x20f   :  { %277 = vrot.lane.b32.xlu0 %v3218_v44, %s3133_s2 }
 0x27b   :  { %v288_v46 = vpop.permute.xlu1 %287 }
 0x27d   :  { %v286_v45 = vpop.permute.xlu0 %285 }
 0x27e   :  { %2752 = vmatprep.mubr.msk.f32.mxu0 %vm58_vm0, %v286_v45  ;;  %v189_v45 = vmul.f32 %v3202_v40, %v3214_v43 }
 0x27f   :  { %2753 = vmatmul.mubr.msk.f32.vlgmr.msra.gmra.mxu0 %vm58_vm0, %v288_v46  ;;  %v3270_v4 = vpop.permute.xlu1 %279 }
 0x280   :  { %v284_v7 = vmul.f32 %v3270_v4, %v3202_v40 }
 0x281   :  { %v3272_v5 = vpop.permute.xlu0 %277 }
 0x282   :  { %v283_v11 = vmul.f32 %v3272_v5, %v3204_v42 }
 0x2cc   :  { %v3224_v47 = vpop.f32.mrf.mxu1 }
 0x2cd   :  { %v272_v41 = vmul.f32 %v3224_v47, %v3232_v53  ;;  %v3339_v47 = vld [vmem:[%s3646_s1] sm:$0xff] }
 0x2ce   :  { %v262_v49 = vpop.f32.mrf.mxu1 }
 0x2cf   :  { %v271_v51 = vmul.f32 %v262_v49, %v3226_v48  ;;  %v274_v46 = vadd.f32 %v272_v41, %v189_v45  ;;  %v3334_v49 = vld [vmem:[%s3646_s1 + $0x8] sm:$0xff]  ;;  %s3134_s1 = smov 64   ;;  %v787_v45 = vld [vmem:[#allocation2 + $0x40] sm:$0xff] }
 0x2d1   :  { %v273_v52 = vadd.f32 %v271_v51, %v188_v50 }
 0x2d3   :  { %2771 = vmatprep.mubr.msk.f32.mxu1 %vm58_vm0, %v273_v52 }
 0x33f   :  { %v2754_v54 = vpop.f32.mrf.mxu0 }
 0x340   :  { %v369_v55 = vmul.f32 %v2754_v54, %v3232_v53 }
 0x341   :  { %v359_v56 = vpop.f32.mrf.mxu0 }
 0x342   :  { %v368_v57 = vmul.f32 %v359_v56, %v3226_v48  ;;  %374 = vrot.lane.b32.xlu1 %v369_v55, %s3133_s2 }
 0x344   :  { %372 = vrot.lane.b32.xlu0 %v368_v57, %s3133_s2  ;;  %v3345_v57 = vld [vmem:[#allocation2 + $0x388] sm:$0xff] }
 0x345   :  { %2774 = vmatprep.subr.mxu0 %v3345_v57 }
 0x346   :  { %402 = vrot.lane.b32.xlu1 %v3237_v58, %s3133_s2  ;;  %2775 = vmatpush3.msra.mxu0 %v3345_v57 }
 0x348   :  { %398 = vrot.lane.b32.xlu0 %v3240_v59, %s3133_s2 }
 0x34a   :  { %400 = vrot.lane.b32.xlu1 %v3244_v60, %s3133_s2 }
 0x34c   :  { %394 = vrot.lane.b32.xlu0 %v3248_v61, %s3133_s2 }
 0x34e   :  { %396 = vrot.lane.b32.xlu1 %v3252_v62, %s3133_s2 }
 0x350   :  { %390 = vrot.lane.b32.xlu0 %v3256_v63, %s3133_s2 }
 0x352   :  { %392 = vrot.lane.b32.xlu1 %v3260_v2, %s3133_s2 }
 0x356   :  { %388 = vrot.lane.b32.xlu1 %v3266_v3, %s3133_s2 }
 0x3b4   :  { %v375_v6 = vpop.permute.xlu1 %374 }
 0x3b5   :  { %v379_v9 = vadd.f32 %v375_v6, %v284_v7  ;;  %v3349_v6 = vld [vmem:[#allocation2 + $0x380] sm:$0xff]  ;;  %v3355_v7 = vld [vmem:[#allocation2 + $0x378] sm:$0xff] }
 0x3b6   :  { %v373_v8 = vpop.permute.xlu0 %372  ;;  %2776 = vmatprep.subr.mxu0 %v3349_v6 }
 0x3b7   :  { %v378_v14 = vadd.f32 %v373_v8, %v283_v11  ;;  %2777 = vmatpush3.msra.mxu0 %v3349_v6  ;;  %v3359_v8 = vld [vmem:[#allocation2 + $0x370] sm:$0xff] }
 0x3b8   :  { %v3276_v10 = vpop.permute.xlu1 %402  ;;  %2778 = vmatprep.subr.mxu0 %v3355_v7 }
 0x3b9   :  { %v419_v12 = vmul.f32 %v3276_v10, %v379_v9  ;;  %2779 = vmatpush3.msra.mxu0 %v3355_v7 }
 0x3ba   :  { %v3281_v13 = vpop.permute.xlu0 %398  ;;  %2780 = vmatprep.subr.mxu0 %v3359_v8 }
 0x3bb   :  { %474 = vrot.lane.b32.xlu0 %v419_v12, %s3132_s0  ;;  %v417_v16 = vmul.f32 %v3281_v13, %v379_v9  ;;  %2781 = vmatpush3.msra.mxu0 %v3359_v8 }
 0x3bc   :  { %v3284_v15 = vpop.permute.xlu1 %400 }
 0x3bd   :  { %v418_v17 = vmul.f32 %v3284_v15, %v378_v14 }
 0x3be   :  { %v3288_v19 = vpop.permute.xlu0 %394 }
 0x3bf   :  { %472 = vrot.lane.b32.xlu1 %v418_v17, %s3132_s0  ;;  %470 = vrot.lane.b32.xlu0 %v417_v16, %s3132_s0  ;;  %v415_v21 = vmul.f32 %v3288_v19, %v379_v9 }
 0x3c0   :  { %v3292_v20 = vpop.permute.xlu1 %396 }
 0x3c1   :  { %v416_v22 = vmul.f32 %v3292_v20, %v378_v14 }
 0x3c2   :  { %v3296_v23 = vpop.permute.xlu0 %390 }
 0x3c3   :  { %468 = vrot.lane.b32.xlu1 %v416_v22, %s3132_s0  ;;  %466 = vrot.lane.b32.xlu0 %v415_v21, %s3132_s0  ;;  %v413_v25 = vmul.f32 %v3296_v23, %v379_v9  ;;  %v3371_v9 = vld [vmem:[#allocation2 + $0x360] sm:$0xff] }
 0x3c4   :  { %v3300_v24 = vpop.permute.xlu1 %392 }
 0x3c5   :  { %v414_v26 = vmul.f32 %v3300_v24, %v378_v14 }
 0x3c7   :  { %464 = vrot.lane.b32.xlu1 %v414_v26, %s3132_s0  ;;  %462 = vrot.lane.b32.xlu0 %v413_v25, %s3132_s0 }
 0x3c8   :  { %v3306_v27 = vpop.permute.xlu1 %388 }
 0x3c9   :  { %v412_v28 = vmul.f32 %v3306_v27, %v378_v14 }
 0x3cb   :  { %460 = vrot.lane.b32.xlu1 %v412_v28, %s3132_s0 }
 0x42d   :  { %v475_v29 = vpop.permute.xlu0 %474 }
 0x42e   :  { %2755 = vmatprep.subr.msk.mxu1 %vm58_vm0, %v475_v29 }
 0x42f   :  { %2756 = vmatpush3.xpose.msk.msra.mxu1 %vm58_vm0, %v475_v29 }
 0x431   :  { %v473_v30 = vpop.permute.xlu1 %472  ;;  %v471_v31 = vpop.permute.xlu0 %470 }
 0x432   :  { %2757 = vmatprep.subr.msk.mxu1 %vm58_vm0, %v473_v30 }
 0x433   :  { %2758 = vmatpush3.xpose.msk.msra.mxu1 %vm58_vm0, %v473_v30 }
 0x434   :  { %2759 = vmatprep.subr.msk.mxu1 %vm58_vm0, %v471_v31 }
 0x435   :  { %v469_v32 = vpop.permute.xlu1 %468  ;;  %v467_v33 = vpop.permute.xlu0 %466 }
 0x437   :  { %2760 = vmatpush3.xpose.msk.msra.mxu1 %vm58_vm0, %v471_v31 }
 0x438   :  { %2761 = vmatprep.subr.msk.mxu1 %vm58_vm0, %v469_v32 }
 0x439   :  { %v465_v34 = vpop.permute.xlu1 %464  ;;  %v463_v38 = vpop.permute.xlu0 %462 }
 0x43b   :  { %2762 = vmatpush3.xpose.msk.msra.mxu1 %vm58_vm0, %v469_v32 }
 0x43c   :  { %2763 = vmatprep.subr.msk.mxu1 %vm58_vm0, %v467_v33 }
 0x43d   :  { %v461_v39 = vpop.permute.xlu1 %460 }
 0x43f   :  { %2764 = vmatpush3.xpose.msk.msra.mxu1 %vm58_vm0, %v467_v33 }
 0x440   :  { %2765 = vmatprep.subr.msk.mxu1 %vm58_vm0, %v465_v34 }
 0x443   :  { %2766 = vmatpush3.xpose.msk.msra.mxu1 %vm58_vm0, %v465_v34 }
 0x444   :  { %2767 = vmatprep.subr.msk.mxu1 %vm58_vm0, %v463_v38 }
 0x447   :  { %2768 = vmatpush3.xpose.msk.msra.mxu1 %vm58_vm0, %v463_v38 }
 0x448   :  { %2769 = vmatprep.subr.msk.mxu1 %vm58_vm0, %v461_v39 }
 0x44b   :  { %2770 = vmatpush3.xpose.msk.msra.mxu1 %vm58_vm0, %v461_v39 }
 0x44c   :  { %2812 = vmatprep.subr.mxu1 %v787_v45 }
 0x44e   :  { %2772 = vmatmul.mubr.msk.f32.vlgmr.msra.gmra.mxu1 %vm58_vm0, %v274_v46  ;;  %v786_v46 = vld [vmem:[#allocation2 + $0x38] sm:$0xff] }
 0x44f   :  { %2813 = vmatpush3.msra.mxu1 %v787_v45 }
 0x450   :  { %2814 = vmatprep.subr.mxu1 %v786_v46 }
 0x451   :  { %2815 = vmatpush3.msra.mxu1 %v786_v46 }
 0x50e   :  { %v2773_v50 = vpop.f32.mrf.mxu1 }
 0x50f   :  { %v570_v51 = vadd.f32 %v2773_v50, %v3334_v49 }
 0x510   :  { %v564_v52 = vpop.f32.mrf.mxu1 }
 0x511   :  { %v565_v54 = vadd.f32 %v564_v52, %v3339_v47  ;;  %v577_v55 = vsel %vm573_vm1, %v570_v51, -inf }
 0x512   :  { %578 = vmax.xlane.f32.xlu1 %v577_v55 }
 0x513   :  { %v574_v56 = vsel %vm573_vm1, %v565_v54, -inf }
 0x514   :  { %575 = vmax.xlane.f32.xlu0 %v574_v56 }
 0x523   :  { %432 = vrot.lane.b32.xlu1 %v3244_v60, %s3134_s1  ;;  %v3365_v60 = vld [vmem:[#allocation2 + $0x368] sm:$0xff] }
 0x524   :  { %2782 = vmatprep.subr.mxu0 %v3365_v60 }
 0x525   :  { %2783 = vmatpush3.msra.mxu0 %v3365_v60 }
 0x526   :  { %2784 = vmatprep.subr.mxu0 %v3371_v9 }
 0x527   :  { %428 = vrot.lane.b32.xlu1 %v3252_v62, %s3134_s1  ;;  %2785 = vmatpush3.msra.mxu0 %v3371_v9  ;;  %v3377_v62 = vld [vmem:[#allocation2 + $0x358] sm:$0xff] }
 0x528   :  { %2786 = vmatprep.subr.mxu0 %v3377_v62 }
 0x529   :  { %2787 = vmatpush3.msra.mxu0 %v3377_v62 }
 0x52a   :  { %434 = vrot.lane.b32.xlu0 %v3237_v58, %s3134_s1  ;;  %v3383_v58 = vld [vmem:[#allocation2 + $0x350] sm:$0xff] }
 0x52b   :  { %424 = vrot.lane.b32.xlu1 %v3260_v2, %s3134_s1  ;;  %2788 = vmatprep.subr.mxu0 %v3383_v58 }
 0x52c   :  { %2789 = vmatpush3.msra.mxu0 %v3383_v58 }
 0x52e   :  { %430 = vrot.lane.b32.xlu0 %v3240_v59, %s3134_s1 }
 0x52f   :  { %420 = vrot.lane.b32.xlu1 %v3266_v3, %s3134_s1 }
 0x532   :  { %426 = vrot.lane.b32.xlu0 %v3248_v61, %s3134_s1 }
 0x536   :  { %422 = vrot.lane.b32.xlu0 %v3256_v63, %s3134_s1 }
 0x59b   :  { %v579_v2 = vpop.xlane.xlu1 %578 }
 0x59c   :  { %v581_v11 = vsub.f32 %v570_v51, %v579_v2 }
 0x59d   :  { %v576_v59 = vpop.xlane.xlu0 %575 }
 0x59e   :  { %v580_v12 = vsub.f32 %v565_v54, %v576_v59  ;;  %v584_v14 = vmul.f32 1.442695, %v581_v11 }
 0x59f   :  { %v3393_v16 = vpop.permute.xlu1 %432 }
 0x5a0   :  { %v582_v17 = vmul.f32 1.442695, %v580_v12  ;;  %v450_v3 = vmul.f32 %v3393_v16, %v3204_v42 }
 0x5a1   :  { %v3397_v21 = vpop.permute.xlu0 %434 }
 0x5a2   :  { %3059 = vpow2.f32 %v582_v17  ;;  %v451_v61 = vmul.f32 %v3397_v21, %v3202_v40  ;;  %691 = vrot.lane.b32.xlu1 %v450_v3, %s3134_s1  ;;  %v785_v3 = vld [vmem:[#allocation2 + $0x30] sm:$0xff] }
 0x5a3   :  { %3061 = vpow2.f32 %v584_v14  ;;  %v3402_v63 = vpop.permute.xlu1 %428  ;;  %2816 = vmatprep.subr.mxu1 %v785_v3 }
 0x5a4   :  { %v448_v22 = vmul.f32 %v3402_v63, %v3204_v42  ;;  %693 = vrot.lane.b32.xlu0 %v451_v61, %s3134_s1  ;;  %2817 = vmatpush3.msra.mxu1 %v785_v3  ;;  %v784_v61 = vld [vmem:[#allocation2 + $0x28] sm:$0xff] }
 0x5a5   :  { %v3407_v25 = vpop.permute.xlu0 %430  ;;  %2818 = vmatprep.subr.mxu1 %v784_v61  ;;  %v1033_v3 = vld [vmem:[#allocation2 + $0x108] sm:$0xff] }
 0x5a6   :  { %v449_v26 = vmul.f32 %v3407_v25, %v3202_v40  ;;  %687 = vrot.lane.b32.xlu1 %v448_v22, %s3134_s1  ;;  %2819 = vmatpush3.msra.mxu1 %v784_v61  ;;  %v1032_v61 = vld [vmem:[#allocation2 + $0x100] sm:$0xff] }
 0x5a7   :  { %v3412_v28 = vpop.permute.xlu1 %424 }
 0x5a8   :  { %v446_v29 = vmul.f32 %v3412_v28, %v3204_v42  ;;  %689 = vrot.lane.b32.xlu0 %v449_v26, %s3134_s1 }
 0x5a9   :  { %v3417_v30 = vpop.permute.xlu0 %426 }
 0x5aa   :  { %v447_v31 = vmul.f32 %v3417_v30, %v3202_v40  ;;  %683 = vrot.lane.b32.xlu1 %v446_v29, %s3134_s1 }
 0x5ab   :  { %v3422_v32 = vpop.permute.xlu1 %420 }
 0x5ac   :  { %v444_v33 = vmul.f32 %v3422_v32, %v3204_v42  ;;  %685 = vrot.lane.b32.xlu0 %v447_v31, %s3134_s1  ;;  %v2497_v31 = vld [vmem:[#allocation2 + $0x48] ss:$0 sm:$0xff] }
 0x5ad   :  { %v3427_v34 = vpop.permute.xlu0 %422 }
 0x5ae   :  { %v445_v38 = vmul.f32 %v3427_v34, %v3202_v40  ;;  %679 = vrot.lane.b32.xlu1 %v444_v33, %s3134_s1 }
 0x5af   :  { %v3060_v39 = vpop.eup %3059 }
 0x5b0   :  { %v3062_v41 = vpop.eup %3061  ;;  %2790 = vmatprep.mubr.msk.f32.mxu0 %vm573_vm1, %v3060_v39  ;;  %681 = vrot.lane.b32.xlu0 %v445_v38, %s3134_s1 }
 0x5b1   :  { %2791 = vmatmul.mubr.msk.f32.vlgmr.msra.gmra.mxu0 %vm573_vm1, %v3062_v41 }
 0x614   :  { %v692_v42 = vpop.permute.xlu1 %691 }
 0x616   :  { %v694_v50 = vpop.permute.xlu0 %693 }
 0x617   :  { %2793 = vmatprep.subr.mxu0 %v694_v50 }
 0x618   :  { %v688_v40 = vpop.permute.xlu1 %687  ;;  %2794 = vmatpush3.msra.mxu0 %v694_v50 }
 0x619   :  { %2795 = vmatprep.subr.mxu0 %v692_v42 }
 0x61a   :  { %2796 = vmatpush3.msra.mxu0 %v692_v42  ;;  %v690_v51 = vpop.permute.xlu0 %689 }
 0x61b   :  { %2797 = vmatprep.subr.mxu0 %v690_v51 }
 0x61c   :  { %2798 = vmatpush3.msra.mxu0 %v690_v51  ;;  %v684_v52 = vpop.permute.xlu1 %683 }
 0x61d   :  { %2799 = vmatprep.subr.mxu0 %v688_v40 }
 0x61e   :  { %2800 = vmatpush3.msra.mxu0 %v688_v40  ;;  %v686_v54 = vpop.permute.xlu0 %685 }
 0x61f   :  { %2801 = vmatprep.subr.mxu0 %v686_v54 }
 0x620   :  { %2802 = vmatpush3.msra.mxu0 %v686_v54  ;;  %v680_v56 = vpop.permute.xlu1 %679 }
 0x621   :  { %2803 = vmatprep.subr.mxu0 %v684_v52 }
 0x622   :  { %2804 = vmatpush3.msra.mxu0 %v684_v52  ;;  %v682_v55 = vpop.permute.xlu0 %681 }
 0x623   :  { %2805 = vmatprep.subr.mxu0 %v682_v55 }
 0x624   :  { %2806 = vmatpush3.msra.mxu0 %v682_v55 }
 0x625   :  { %2807 = vmatprep.subr.mxu0 %v680_v56 }
 0x626   :  { %2808 = vmatpush3.msra.mxu0 %v680_v56 }
 0x671   :  { %v2792_v2 = vpop.f32.mrf.mxu0 }
 0x672   :  { %3063 = vrcp.f32 %v2792_v2 }
 0x673   :  { %v658_v11 = vpop.f32.mrf.mxu0 }
 0x674   :  { %3065 = vrcp.f32 %v658_v11  ;;  %v921_v11 = vld [vmem:[#allocation2 + $0x88] sm:$0xff] }
 0x675   :  { %2823 = vmatprep.subr.mxu0 %v921_v11 }
 0x67f   :  { %v3064_v59 = vpop.eup %3063 }
 0x680   :  { %v670_v17 = vmul.f32 %v3064_v59, %v3062_v41  ;;  %v920_v59 = vld [vmem:[#allocation2 + $0x80] sm:$0xff] }
 0x681   :  { %v3066_v12 = vpop.eup %3065 }
 0x682   :  { %v669_v14 = vmul.f32 %v3066_v12, %v3060_v39  ;;  %v919_v12 = vld [vmem:[#allocation2 + $0x78] sm:$0xff] }
 0x684   :  { %2809 = vmatprep.mubr.msk.f32.mxu0 %vm573_vm1, %v669_v14  ;;  %v918_v14 = vld [vmem:[#allocation2 + $0x70] sm:$0xff] }
 0x685   :  { %2810 = vmatmul.mubr.msk.f32.vlgmr.msra.gmra.mxu0 %vm573_vm1, %v670_v17  ;;  %v1034_v17 = vld [vmem:[#allocation2 + $0x110] sm:$0xff] }
 0x686   :  { %2824 = vmatpush3.msra.mxu0 %v921_v11  ;;  %2834 = vmatprep.subr.mxu1 %v1034_v17  ;;  %v1030_v11 = vld [vmem:[#allocation2 + $0xf0] sm:$0xff] }
 0x687   :  { %2825 = vmatprep.subr.mxu0 %v920_v59 }
 0x688   :  { %2826 = vmatpush3.msra.mxu0 %v920_v59  ;;  %v1029_v59 = vld [vmem:[#allocation2 + $0xe8] sm:$0xff] }
 0x689   :  { %2827 = vmatprep.subr.mxu0 %v919_v12 }
 0x68a   :  { %2828 = vmatpush3.msra.mxu0 %v919_v12  ;;  %v1026_v12 = vld [vmem:[#allocation2 + $0xd0] sm:$0xff] }
 0x68b   :  { %2829 = vmatprep.subr.mxu0 %v918_v14 }
 0x68c   :  { %2830 = vmatpush3.msra.mxu0 %v918_v14  ;;  %v1025_v14 = vld [vmem:[#allocation2 + $0xc8] sm:$0xff] }
 0x745   :  { %v2811_v22 = vpop.f32.mrf.mxu0 }
 0x747   :  { %v775_v26 = vpop.f32.mrf.mxu0 }
 0x748   :  { %2820 = vmatprep.mubr.msk.f32.mxu1 %vm58_vm0, %v775_v26 }
 0x749   :  { %2821 = vmatmul.mubr.msk.f32.vlgmr.msra.gmra.mxu1 %vm58_vm0, %v2811_v22 }
 0x74a   :  { %2835 = vmatpush3.msra.mxu1 %v1034_v17  ;;  %v1024_v17 = vld [vmem:[#allocation2 + $0xc0] sm:$0xff] }
 0x74b   :  { %2836 = vmatprep.subr.mxu1 %v1033_v3 }
 0x74c   :  { %2837 = vmatpush3.msra.mxu1 %v1033_v3  ;;  %v1023_v3 = vld [vmem:[#allocation2 + $0xb8] sm:$0xff] }
 0x74d   :  { %2838 = vmatprep.subr.mxu1 %v1032_v61 }
 0x74e   :  { %2839 = vmatpush3.msra.mxu1 %v1032_v61  ;;  %v1022_v61 = vld [vmem:[#allocation2 + $0xb0] sm:$0xff] }
 0x809   :  { %v2822_v29 = vpop.f32.mrf.mxu1 }
 0x80a   :  { %v870_v33 = vadd.f32 %v2822_v29, %v3166_v1 }
 0x80b   :  { %v860_v38 = vpop.f32.mrf.mxu1 }
 0x80c   :  { %v3440_v39 = vadd.f32 %v2497_v31, %v870_v33  ;;  %v869_v41 = vadd.f32 %v860_v38, %v3161_v0 }
 0x80e   :  { %v3443_v45 = vadd.f32 %v2497_v31, %v869_v41  ;;  %v883_v46 = vsel %vm58_vm0, %v3440_v39, 0.0 }
 0x80f   :  { %884 = vadd.xlane.f32.xlu1 %v883_v46  ;;  %v2498_v46 = vld [vmem:[#allocation2 + $0x60] ss:$0 sm:$0xff] }
 0x810   :  { %v880_v42 = vsel %vm58_vm0, %v3443_v45, 0.0 }
 0x811   :  { %881 = vadd.xlane.f32.xlu0 %v880_v42 }
 0x898   :  { %v885_v50 = vpop.xlane.xlu1 %884 }
 0x899   :  { %v887_v40 = vmul.f32 0.03125, %v885_v50  ;;  %v2499_v50 = vld [vmem:[#allocation2 + $0x68] ss:$0 sm:$0xff] }
 0x89a   :  { %v882_v51 = vpop.xlane.xlu0 %881 }
 0x89b   :  { %v886_v52 = vmul.f32 0.03125, %v882_v51  ;;  %v889_v1 = vsub.f32 %v3440_v39, %v887_v40 }
 0x89d   :  { %v888_v54 = vsub.f32 %v3443_v45, %v886_v52  ;;  %v891_v56 = vmul.f32 %v889_v1, %v889_v1 }
 0x89f   :  { %v890_v55 = vmul.f32 %v888_v54, %v888_v54  ;;  %v895_v2 = vsel %vm58_vm0, %v891_v56, 0.0 }
 0x8a1   :  { %v892_v0 = vsel %vm58_vm0, %v890_v55, 0.0 }
 0x8a2   :  { %893 = vadd.xlane.f32.xlu0 %v892_v0 }
 0x8a6   :  { %896 = vadd.xlane.f32.xlu0 %v895_v2  ;;  %v1031_v2 = vld [vmem:[#allocation2 + $0xf8] sm:$0xff] }
 0x8a7   :  { %2840 = vmatprep.subr.mxu1 %v1031_v2 }
 0x8a8   :  { %2841 = vmatpush3.msra.mxu1 %v1031_v2 }
 0x8a9   :  { %2842 = vmatprep.subr.mxu1 %v1030_v11 }
 0x8aa   :  { %2843 = vmatpush3.msra.mxu1 %v1030_v11 }
 0x8ab   :  { %2844 = vmatprep.subr.mxu1 %v1029_v59 }
 0x8ac   :  { %2845 = vmatpush3.msra.mxu1 %v1029_v59 }
 0x92b   :  { %v894_v22 = vpop.xlane.xlu0 %893 }
 0x92c   :  { %v898_v26 = vmul.f32 0.03125, %v894_v22  ;;  %v1021_v22 = vld [vmem:[#allocation2 + $0xa8] sm:$0xff] }
 0x92e   :  { %v900_v29 = vadd.f32 1e-05, %v898_v26  ;;  %v1020_v26 = vld [vmem:[#allocation2 + $0xa0] sm:$0xff] }
 0x92f   :  { %v897_v31 = vpop.xlane.xlu0 %896 }
 0x930   :  { %3067 = vrsqrt.f32 %v900_v29  ;;  %v899_v33 = vmul.f32 0.03125, %v897_v31  ;;  %v1019_v29 = vld [vmem:[#allocation2 + $0x98] sm:$0xff]  ;;  %v2500_v31 = vld [vmem:[#allocation2 + $0x90] ss:$0 sm:$0xff] }
 0x932   :  { %v901_v38 = vadd.f32 1e-05, %v899_v33 }
 0x934   :  { %3069 = vrsqrt.f32 %v901_v38 }
 0x93d   :  { %v3068_v41 = vpop.eup %3067 }
 0x93e   :  { %v904_v42 = vmul.f32 %v3068_v41, %v888_v54  ;;  %v1028_v54 = vld [vmem:[#allocation2 + $0xe0] sm:$0xff] }
 0x93f   :  { %2846 = vmatprep.subr.mxu1 %v1028_v54 }
 0x940   :  { %v910_v40 = vmul.f32 %v2498_v46, %v904_v42  ;;  %2847 = vmatpush3.msra.mxu1 %v1028_v54 }
 0x941   :  { %v3070_v51 = vpop.eup %3069 }
 0x942   :  { %v905_v52 = vmul.f32 %v3070_v51, %v889_v1  ;;  %v916_v55 = vadd.f32 %v2499_v50, %v910_v40  ;;  %v1027_v1 = vld [vmem:[#allocation2 + $0xd8] sm:$0xff] }
 0x943   :  { %2848 = vmatprep.subr.mxu1 %v1027_v1 }
 0x944   :  { %v911_v0 = vmul.f32 %v2498_v46, %v905_v52  ;;  %2831 = vmatprep.mubr.msk.f32.mxu0 %vm58_vm0, %v916_v55  ;;  %2849 = vmatpush3.msra.mxu1 %v1027_v1 }
 0x945   :  { %2850 = vmatprep.subr.mxu1 %v1026_v12 }
 0x946   :  { %v917_v56 = vadd.f32 %v2499_v50, %v911_v0  ;;  %2851 = vmatpush3.msra.mxu1 %v1026_v12 }
 0x947   :  { %2852 = vmatprep.subr.mxu1 %v1025_v14 }
 0x948   :  { %2832 = vmatmul.mubr.msk.f32.vlgmr.msra.gmra.mxu0 %vm58_vm0, %v917_v56  ;;  %2853 = vmatpush3.msra.mxu1 %v1025_v14 }
 0x949   :  { %2854 = vmatprep.subr.mxu1 %v1024_v17 }
 0x94a   :  { %2855 = vmatpush3.msra.mxu1 %v1024_v17 }
 0x94b   :  { %2856 = vmatprep.subr.mxu1 %v1023_v3 }
 0x94c   :  { %2857 = vmatpush3.msra.mxu1 %v1023_v3 }
 0x94d   :  { %2858 = vmatprep.subr.mxu1 %v1022_v61 }
 0x94e   :  { %2859 = vmatpush3.msra.mxu1 %v1022_v61 }
 0x94f   :  { %2860 = vmatprep.subr.mxu1 %v1021_v22 }
 0x950   :  { %2861 = vmatpush3.msra.mxu1 %v1021_v22 }
 0x951   :  { %2862 = vmatprep.subr.mxu1 %v1020_v26 }
 0x952   :  { %2863 = vmatpush3.msra.mxu1 %v1020_v26  ;;  %v1162_v26 = vld [vmem:[#allocation2 + $0x138] sm:$0xff] }
 0x953   :  { %2864 = vmatprep.subr.mxu1 %v1019_v29  ;;  %2869 = vmatprep.subr.mxu0 %v1162_v26 }
 0x954   :  { %2865 = vmatpush3.msra.mxu1 %v1019_v29  ;;  %v1161_v29 = vld [vmem:[#allocation2 + $0x130] sm:$0xff]  ;;  %2870 = vmatpush3.msra.mxu0 %v1162_v26 }
 0x955   :  { %2921 = vmatprep.subr.mxu1 %v3345_v57  ;;  %2871 = vmatprep.subr.mxu0 %v1161_v29 }
 0x956   :  { %2872 = vmatpush3.msra.mxu0 %v1161_v29 }
 0xa08   :  { %v2833_v33 = vpop.f32.mrf.mxu0 }
 0xa09   :  { %v1005_v38 = vadd.f32 %v2833_v33, %v2500_v31  ;;  %v1159_v33 = vld [vmem:[#allocation2 + $0x120] sm:$0xff] }
 0xa0a   :  { %v999_v41 = vpop.f32.mrf.mxu0 }
 0xa0b   :  { %v1012_v46 = vmul.f32 0.70710677, %v1005_v38  ;;  %v1000_v42 = vadd.f32 %v2500_v31, %v999_v41  ;;  %v1009_v56 = vmul.f32 0.5, %v1005_v38  ;;  %v1160_v31 = vld [vmem:[#allocation2 + $0x128] sm:$0xff] }
 0xa0c   :  { %2873 = vmatprep.subr.mxu0 %v1160_v31 }
 0xa0d   :  { %3071 = verf.f32 %v1012_v46  ;;  %v1011_v50 = vmul.f32 0.70710677, %v1000_v42  ;;  %v1008_v55 = vmul.f32 0.5, %v1000_v42  ;;  %2874 = vmatpush3.msra.mxu0 %v1160_v31 }
 0xa0e   :  { %2875 = vmatprep.subr.mxu0 %v1159_v33 }
 0xa0f   :  { %3073 = verf.f32 %v1011_v50  ;;  %2876 = vmatpush3.msra.mxu0 %v1159_v33 }
 0xa10   :  { %2880 = vmatprep.subr.mxu0 %v3176_v18 }
 0xa1a   :  { %v3072_v40 = vpop.eup %3071 }
 0xa1b   :  { %v1016_v52 = vadd.f32 1.0, %v3072_v40 }
 0xa1c   :  { %v3074_v51 = vpop.eup %3073 }
 0xa1d   :  { %v1015_v0 = vadd.f32 1.0, %v3074_v51  ;;  %v1018_v11 = vmul.f32 %v1016_v52, %v1009_v56  ;;  %v2504_v52 = vld [vmem:[#allocation2 + $0x170] ss:$0 sm:$0xff] }
 0xa1f   :  { %v1017_v2 = vmul.f32 %v1015_v0, %v1008_v55 }
 0xa21   :  { %2866 = vmatprep.mubr.f32.mxu1 %v1017_v2 }
 0xa22   :  { %2867 = vmatmul.mubr.f32.vlgmr.msra.gmra.mxu1 %v1018_v11  ;;  %v2505_v11 = vld [vmem:[#allocation2 + $0x178] ss:$0 sm:$0xff] }
 0xa23   :  { %2922 = vmatpush3.msra.mxu1 %v3345_v57 }
 0xa24   :  { %2923 = vmatprep.subr.mxu1 %v3349_v6 }
 0xa25   :  { %2924 = vmatpush3.msra.mxu1 %v3349_v6  ;;  %v2503_v6 = vld [vmem:[#allocation2 + $0x118] ss:$0 sm:$0xff] }
 0xa26   :  { %2925 = vmatprep.subr.mxu1 %v3355_v7 }
 0xa27   :  { %2926 = vmatpush3.msra.mxu1 %v3355_v7 }
 0xa28   :  { %2927 = vmatprep.subr.mxu1 %v3359_v8 }
 0xa29   :  { %2928 = vmatpush3.msra.mxu1 %v3359_v8 }
 0xa2a   :  { %2929 = vmatprep.subr.mxu1 %v3365_v60 }
 0xa2b   :  { %2930 = vmatpush3.msra.mxu1 %v3365_v60 }
 0xa2c   :  { %2931 = vmatprep.subr.mxu1 %v3371_v9 }
 0xa2d   :  { %2932 = vmatpush3.msra.mxu1 %v3371_v9 }
 0xa2e   :  { %2933 = vmatprep.subr.mxu1 %v3377_v62 }
 0xa2f   :  { %2934 = vmatpush3.msra.mxu1 %v3377_v62 }
 0xa30   :  { %2935 = vmatprep.subr.mxu1 %v3383_v58 }
 0xa31   :  { %2936 = vmatpush3.msra.mxu1 %v3383_v58 }
 0xae2   :  { %v2868_v57 = vpop.f32.mrf.mxu1 }
 0xae3   :  { %v1111_v7 = vadd.f32 %v2868_v57, %v3440_v39 }
 0xae4   :  { %v1101_v8 = vpop.f32.mrf.mxu1 }
 0xae5   :  { %v3472_v59 = vadd.f32 %v2503_v6, %v1111_v7  ;;  %v1110_v60 = vadd.f32 %v1101_v8, %v3443_v45  ;;  %v2506_v8 = vld [vmem:[#allocation2 + $0x140] ss:$0 sm:$0xff] }
 0xae7   :  { %v3475_v54 = vadd.f32 %v2503_v6, %v1110_v60  ;;  %v1124_v9 = vsel %vm58_vm0, %v3472_v59, 0.0 }
 0xae8   :  { %1125 = vadd.xlane.f32.xlu1 %v1124_v9 }
 0xae9   :  { %v1121_v62 = vsel %vm58_vm0, %v3475_v54, 0.0 }
 0xaea   :  { %1122 = vadd.xlane.f32.xlu0 %v1121_v62 }
 0xb71   :  { %v1126_v58 = vpop.xlane.xlu1 %1125 }
 0xb72   :  { %v1128_v1 = vmul.f32 0.03125, %v1126_v58 }
 0xb73   :  { %v1123_v12 = vpop.xlane.xlu0 %1122 }
 0xb74   :  { %v1130_v39 = vsub.f32 %v3472_v59, %v1128_v1  ;;  %v1127_v14 = vmul.f32 0.03125, %v1123_v12 }
 0xb76   :  { %v1129_v17 = vsub.f32 %v3475_v54, %v1127_v14  ;;  %v1132_v3 = vmul.f32 %v1130_v39, %v1130_v39 }
 0xb78   :  { %v1136_v45 = vsel %vm58_vm0, %v1132_v3, 0.0  ;;  %v1131_v61 = vmul.f32 %v1129_v17, %v1129_v17 }
 0xb79   :  { %1137 = vadd.xlane.f32.xlu1 %v1136_v45 }
 0xb7a   :  { %v1133_v22 = vsel %vm58_vm0, %v1131_v61, 0.0 }
 0xb7b   :  { %1134 = vadd.xlane.f32.xlu0 %v1133_v22 }
 0xc02   :  { %v1138_v38 = vpop.xlane.xlu1 %1137 }
 0xc03   :  { %v1140_v41 = vmul.f32 0.03125, %v1138_v38 }
 0xc04   :  { %v1135_v46 = vpop.xlane.xlu0 %1134 }
 0xc05   :  { %v1142_v42 = vadd.f32 1e-05, %v1140_v41  ;;  %v1139_v50 = vmul.f32 0.03125, %v1135_v46 }
 0xc07   :  { %3075 = vrsqrt.f32 %v1142_v42  ;;  %v1141_v40 = vadd.f32 1e-05, %v1139_v50 }
 0xc09   :  { %3077 = vrsqrt.f32 %v1141_v40 }
 0xc14   :  { %v3076_v51 = vpop.eup %3075 }
 0xc15   :  { %v1146_v55 = vmul.f32 %v3076_v51, %v1130_v39 }
 0xc16   :  { %v3078_v0 = vpop.eup %3077 }
 0xc17   :  { %v1145_v56 = vmul.f32 %v3078_v0, %v1129_v17  ;;  %v1152_v2 = vmul.f32 %v2504_v52, %v1146_v55 }
 0xc19   :  { %v1151_v57 = vmul.f32 %v2504_v52, %v1145_v56  ;;  %v1158_v7 = vadd.f32 %v2505_v11, %v1152_v2 }
 0xc1b   :  { %v1157_v6 = vadd.f32 %v2505_v11, %v1151_v57 }
 0xc1d   :  { %2877 = vmatprep.mubr.msk.f32.mxu0 %vm58_vm0, %v1157_v6 }
 0xc1e   :  { %2878 = vmatmul.mubr.msk.f32.vlgmr.msra.gmra.mxu0 %vm58_vm0, %v1158_v7 }
 0xc1f   :  { %2881 = vmatpush3.msra.mxu0 %v3176_v18 }
 0xc20   :  { %2882 = vmatprep.subr.mxu0 %v3184_v35 }
 0xc21   :  { %2883 = vmatpush3.msra.mxu0 %v3184_v35 }
 0xc22   :  { %2884 = vmatprep.subr.mxu0 %v3189_v36 }
 0xc23   :  { %2885 = vmatpush3.msra.mxu0 %v3189_v36 }
 0xc24   :  { %2886 = vmatprep.subr.mxu0 %v3195_v37 }
 0xc25   :  { %2887 = vmatpush3.msra.mxu0 %v3195_v37 }
 0xc26   :  { %2891 = vmatprep.subr.mxu0 %v3176_v18 }
 0xcde   :  { %v2879_v60 = vpop.f32.mrf.mxu0 }
 0xcdf   :  { %v3496_v9 = vadd.f32 %v2879_v60, %v2506_v8 }
 0xce0   :  { %v1240_v62 = vpop.f32.mrf.mxu0 }
 0xce1   :  { %v3498_v58 = vadd.f32 %v2506_v8, %v1240_v62  ;;  %1340 = vrot.lane.b32.xlu1 %v3496_v9, %s3132_s0  ;;  %v1337_v26 = vmul.f32 %v3496_v9, %v3270_v4 }
 0xce3   :  { %1338 = vrot.lane.b32.xlu0 %v3498_v58, %s3132_s0  ;;  %2888 = vmatprep.mubr.msk.f32.mxu0 %vm58_vm0, %v3498_v58  ;;  %v1336_v31 = vmul.f32 %v3498_v58, %v3272_v5  ;;  %v1447_v2 = vmul.f32 %v3498_v58, %v3393_v16  ;;  %v1445_v11 = vmul.f32 %v3498_v58, %v3402_v63 }
 0xce4   :  { %2889 = vmatmul.mubr.msk.f32.vlgmr.msra.gmra.mxu0 %vm58_vm0, %v3496_v9  ;;  %v1446_v16 = vmul.f32 %v3496_v9, %v3407_v25  ;;  %v1441_v57 = vmul.f32 %v3498_v58, %v3422_v32  ;;  %v1442_v63 = vmul.f32 %v3496_v9, %v3427_v34 }
 0xce5   :  { %2892 = vmatpush3.msra.mxu0 %v3176_v18  ;;  %v1250_v18 = vmul.f32 %v3496_v9, %v3214_v43 }
 0xce6   :  { %2893 = vmatprep.subr.mxu0 %v3184_v35 }
 0xce7   :  { %2894 = vmatpush3.msra.mxu0 %v3184_v35 }
 0xce8   :  { %2895 = vmatprep.subr.mxu0 %v3189_v36 }
 0xce9   :  { %2896 = vmatpush3.msra.mxu0 %v3189_v36  ;;  %v1249_v36 = vmul.f32 %v3498_v58, %v3218_v44 }
 0xcea   :  { %2897 = vmatprep.subr.mxu0 %v3195_v37 }
 0xceb   :  { %2898 = vmatpush3.msra.mxu0 %v3195_v37 }
 0xd53   :  { %v1341_v12 = vpop.permute.xlu1 %1340 }
 0xd55   :  { %v1339_v1 = vpop.permute.xlu0 %1338 }
 0xd56   :  { %2899 = vmatprep.mubr.msk.f32.mxu0 %vm58_vm0, %v1339_v1 }
 0xd57   :  { %2900 = vmatmul.mubr.msk.f32.vlgmr.msra.gmra.mxu0 %vm58_vm0, %v1341_v12 }
 0xda4   :  { %v2890_v39 = vpop.f32.mrf.mxu0 }
 0xda5   :  { %v1333_v35 = vmul.f32 %v2890_v39, %v3232_v53 }
 0xda6   :  { %v1323_v14 = vpop.f32.mrf.mxu0 }
 0xda7   :  { %v1335_v17 = vadd.f32 %v1333_v35, %v1250_v18  ;;  %v1332_v3 = vmul.f32 %v1323_v14, %v3226_v48  ;;  %v1783_v35 = vld [vmem:[#allocation2 + $0x160] sm:$0xff]  ;;  %v1782_v14 = vld [vmem:[#allocation2 + $0x158] sm:$0xff] }
 0xda9   :  { %v1334_v37 = vadd.f32 %v1332_v3, %v1249_v36 }
 0xdab   :  { %2918 = vmatprep.mubr.msk.f32.mxu0 %vm58_vm0, %v1334_v37 }
 0xe17   :  { %v2901_v45 = vpop.f32.mrf.mxu0 }
 0xe18   :  { %v1422_v61 = vmul.f32 %v2901_v45, %v3232_v53 }
 0xe19   :  { %v1412_v22 = vpop.f32.mrf.mxu0 }
 0xe1a   :  { %1427 = vrot.lane.b32.xlu1 %v1422_v61, %s3133_s2  ;;  %v1421_v43 = vmul.f32 %v1412_v22, %v3226_v48  ;;  %v1781_v22 = vld [vmem:[#allocation2 + $0x150] sm:$0xff] }
 0xe1e   :  { %1425 = vrot.lane.b32.xlu1 %v1421_v43, %s3133_s2  ;;  %v1780_v43 = vld [vmem:[#allocation2 + $0x148] sm:$0xff] }
 0xe8c   :  { %v1428_v29 = vpop.permute.xlu1 %1427 }
 0xe8d   :  { %v1432_v44 = vadd.f32 %v1428_v29, %v1337_v26 }
 0xe8f   :  { %v1440_v33 = vmul.f32 %v1432_v44, %v3276_v10  ;;  %v1438_v53 = vmul.f32 %v1432_v44, %v3281_v13  ;;  %v1436_v4 = vmul.f32 %v1432_v44, %v3288_v19  ;;  %v1434_v5 = vmul.f32 %v1432_v44, %v3296_v23 }
 0xe90   :  { %v1426_v38 = vpop.permute.xlu1 %1425 }
 0xe91   :  { %v1431_v41 = vadd.f32 %v1426_v38, %v1336_v31  ;;  %1471 = vrot.lane.b32.xlu0 %v1440_v33, %s3132_s0  ;;  %v2529_v31 = vld [vmem:[#allocation2 + $0x168] ss:$0 sm:$0xff] }
 0xe93   :  { %v1439_v48 = vmul.f32 %v1431_v41, %v3284_v15  ;;  %v1437_v46 = vmul.f32 %v1431_v41, %v3292_v20  ;;  %v1435_v10 = vmul.f32 %v1431_v41, %v3300_v24  ;;  %v1433_v13 = vmul.f32 %v1431_v41, %v3306_v27 }
 0xe95   :  { %1467 = vrot.lane.b32.xlu0 %v1438_v53, %s3132_s0  ;;  %1469 = vrot.lane.b32.xlu1 %v1439_v48, %s3132_s0 }
 0xe99   :  { %1463 = vrot.lane.b32.xlu0 %v1436_v4, %s3132_s0  ;;  %1465 = vrot.lane.b32.xlu1 %v1437_v46, %s3132_s0 }
 0xe9d   :  { %1459 = vrot.lane.b32.xlu0 %v1434_v5, %s3132_s0  ;;  %1461 = vrot.lane.b32.xlu1 %v1435_v10, %s3132_s0 }
 0xea1   :  { %1457 = vrot.lane.b32.xlu1 %v1433_v13, %s3132_s0 }
 0xf03   :  { %v1472_v15 = vpop.permute.xlu0 %1471 }
 0xf04   :  { %2902 = vmatprep.subr.msk.mxu0 %vm58_vm0, %v1472_v15 }
 0xf05   :  { %2903 = vmatpush3.xpose.msk.msra.mxu0 %vm58_vm0, %v1472_v15 }
 0xf07   :  { %v1470_v19 = vpop.permute.xlu1 %1469  ;;  %v1468_v20 = vpop.permute.xlu0 %1467 }
 0xf08   :  { %2904 = vmatprep.subr.msk.mxu0 %vm58_vm0, %v1470_v19 }
 0xf09   :  { %2905 = vmatpush3.xpose.msk.msra.mxu0 %vm58_vm0, %v1470_v19 }
 0xf0a   :  { %2906 = vmatprep.subr.msk.mxu0 %vm58_vm0, %v1468_v20 }
 0xf0b   :  { %v1466_v23 = vpop.permute.xlu1 %1465  ;;  %v1464_v24 = vpop.permute.xlu0 %1463 }
 0xf0d   :  { %2907 = vmatpush3.xpose.msk.msra.mxu0 %vm58_vm0, %v1468_v20 }
 0xf0e   :  { %2908 = vmatprep.subr.msk.mxu0 %vm58_vm0, %v1466_v23 }
 0xf0f   :  { %v1462_v27 = vpop.permute.xlu1 %1461  ;;  %v1460_v42 = vpop.permute.xlu0 %1459 }
 0xf11   :  { %2909 = vmatpush3.xpose.msk.msra.mxu0 %vm58_vm0, %v1466_v23 }
 0xf12   :  { %2910 = vmatprep.subr.msk.mxu0 %vm58_vm0, %v1464_v24 }
 0xf13   :  { %v1458_v50 = vpop.permute.xlu1 %1457 }
 0xf15   :  { %2911 = vmatpush3.xpose.msk.msra.mxu0 %vm58_vm0, %v1464_v24 }
 0xf16   :  { %2912 = vmatprep.subr.msk.mxu0 %vm58_vm0, %v1462_v27 }
 0xf19   :  { %2913 = vmatpush3.xpose.msk.msra.mxu0 %vm58_vm0, %v1462_v27  ;;  %v1917_v27 = vld [vmem:[#allocation2 + $0x1a8] sm:$0xff] }
 0xf1a   :  { %2914 = vmatprep.subr.msk.mxu0 %vm58_vm0, %v1460_v42 }
 0xf1d   :  { %2915 = vmatpush3.xpose.msk.msra.mxu0 %vm58_vm0, %v1460_v42  ;;  %v1916_v42 = vld [vmem:[#allocation2 + $0x1a0] sm:$0xff] }
 0xf1e   :  { %2916 = vmatprep.subr.msk.mxu0 %vm58_vm0, %v1458_v50 }
 0xf21   :  { %2917 = vmatpush3.xpose.msk.msra.mxu0 %vm58_vm0, %v1458_v50  ;;  %v1915_v50 = vld [vmem:[#allocation2 + $0x198] sm:$0xff] }
 0xf22   :  { %2959 = vmatprep.subr.mxu0 %v1783_v35 }
 0xf24   :  { %2919 = vmatmul.mubr.msk.f32.vlgmr.msra.gmra.mxu0 %vm58_vm0, %v1335_v17 }
 0xf25   :  { %2960 = vmatpush3.msra.mxu0 %v1783_v35  ;;  %v2016_v35 = vld [vmem:[#allocation2 + $0x1c8] sm:$0xff] }
 0xf26   :  { %2961 = vmatprep.subr.mxu0 %v1782_v14 }
 0xf27   :  { %2962 = vmatpush3.msra.mxu0 %v1782_v14  ;;  %v2015_v14 = vld [vmem:[#allocation2 + $0x1c0] sm:$0xff] }
 0xf28   :  { %2963 = vmatprep.subr.mxu0 %v1781_v22 }
 0xf29   :  { %2964 = vmatpush3.msra.mxu0 %v1781_v22 }
 0xf2a   :  { %2965 = vmatprep.subr.mxu0 %v1780_v43 }
 0xf2b   :  { %2966 = vmatpush3.msra.mxu0 %v1780_v43 }
 0xfe4   :  { %v2920_v40 = vpop.f32.mrf.mxu0 }
 0xfe5   :  { %v1567_v51 = vadd.f32 %v2920_v40, %v3334_v49  ;;  %v1448_v49 = vmul.f32 %v3496_v9, %v3397_v21  ;;  %v1444_v21 = vmul.f32 %v3496_v9, %v3417_v30  ;;  %v1914_v40 = vld [vmem:[#allocation2 + $0x190] sm:$0xff] }
 0xfe6   :  { %v1561_v52 = vpop.f32.mrf.mxu0 }
 0xfe7   :  { %v1562_v55 = vadd.f32 %v1561_v52, %v3339_v47  ;;  %v1573_v0 = vsel %vm573_vm1, %v1567_v51, -inf  ;;  %v1443_v47 = vmul.f32 %v3498_v58, %v3412_v28  ;;  %v2028_v52 = vld [vmem:[#allocation2 + $0x228] sm:$0xff] }
 0xfe8   :  { %1574 = vmax.xlane.f32.xlu1 %v1573_v0 }
 0xfe9   :  { %v1570_v56 = vsel %vm573_vm1, %v1562_v55, -inf }
 0xfea   :  { %1571 = vmax.xlane.f32.xlu0 %v1570_v56 }
 0xff9   :  { %1687 = vrot.lane.b32.xlu1 %v1447_v2, %s3134_s1 }
 0xffd   :  { %1683 = vrot.lane.b32.xlu1 %v1445_v11, %s3134_s1 }
0x1000   :  { %1689 = vrot.lane.b32.xlu0 %v1448_v49, %s3134_s1 }
0x1001   :  { %1679 = vrot.lane.b32.xlu1 %v1443_v47, %s3134_s1 }
0x1004   :  { %1685 = vrot.lane.b32.xlu0 %v1446_v16, %s3134_s1 }
0x1005   :  { %1675 = vrot.lane.b32.xlu1 %v1441_v57, %s3134_s1  ;;  %v2530_v57 = vld [vmem:[#allocation2 + $0x180] ss:$0 sm:$0xff] }
0x1008   :  { %1681 = vrot.lane.b32.xlu0 %v1444_v21, %s3134_s1 }
0x100c   :  { %1677 = vrot.lane.b32.xlu0 %v1442_v63, %s3134_s1  ;;  %v2531_v63 = vld [vmem:[#allocation2 + $0x188] ss:$0 sm:$0xff] }
0x1071   :  { %v1575_v28 = vpop.xlane.xlu1 %1574 }
0x1072   :  { %v1577_v6 = vsub.f32 %v1567_v51, %v1575_v28  ;;  %v2029_v51 = vld [vmem:[#allocation2 + $0x230] sm:$0xff] }
0x1073   :  { %v1572_v25 = vpop.xlane.xlu0 %1571  ;;  %2981 = vmatprep.subr.mxu0 %v2029_v51 }
0x1074   :  { %v1576_v7 = vsub.f32 %v1562_v55, %v1572_v25  ;;  %v1580_v8 = vmul.f32 1.442695, %v1577_v6  ;;  %v2027_v55 = vld [vmem:[#allocation2 + $0x220] sm:$0xff] }
0x1075   :  { %v1688_v62 = vpop.permute.xlu1 %1687 }
0x1076   :  { %v1578_v32 = vmul.f32 1.442695, %v1576_v7 }
0x1077   :  { %v1690_v60 = vpop.permute.xlu0 %1689 }
0x1078   :  { %3079 = vpow2.f32 %v1578_v32  ;;  %2940 = vmatprep.subr.mxu1 %v1690_v60 }
0x1079   :  { %3081 = vpow2.f32 %v1580_v8  ;;  %v1684_v34 = vpop.permute.xlu1 %1683 }
0x107b   :  { %v1686_v1 = vpop.permute.xlu0 %1685 }
0x107d   :  { %v1680_v12 = vpop.permute.xlu1 %1679 }
0x107f   :  { %v1682_v9 = vpop.permute.xlu0 %1681 }
0x1081   :  { %v1676_v18 = vpop.permute.xlu1 %1675 }
0x1083   :  { %v1678_v39 = vpop.permute.xlu0 %1677 }
0x1085   :  { %v3080_v58 = vpop.eup %3079 }
0x1086   :  { %v3082_v30 = vpop.eup %3081  ;;  %2937 = vmatprep.mubr.msk.f32.mxu1 %vm573_vm1, %v3080_v58 }
0x1087   :  { %2938 = vmatmul.mubr.msk.f32.vlgmr.msra.gmra.mxu1 %vm573_vm1, %v3082_v30 }
0x1088   :  { %2941 = vmatpush3.msra.mxu1 %v1690_v60  ;;  %v2026_v60 = vld [vmem:[#allocation2 + $0x218] sm:$0xff] }
0x1089   :  { %2942 = vmatprep.subr.mxu1 %v1688_v62 }
0x108a   :  { %2943 = vmatpush3.msra.mxu1 %v1688_v62  ;;  %v2025_v62 = vld [vmem:[#allocation2 + $0x210] sm:$0xff] }
0x108b   :  { %2944 = vmatprep.subr.mxu1 %v1686_v1 }
0x108c   :  { %2945 = vmatpush3.msra.mxu1 %v1686_v1  ;;  %v2022_v1 = vld [vmem:[#allocation2 + $0x1f8] sm:$0xff] }
0x108d   :  { %2946 = vmatprep.subr.mxu1 %v1684_v34 }
0x108e   :  { %2947 = vmatpush3.msra.mxu1 %v1684_v34  ;;  %v2021_v34 = vld [vmem:[#allocation2 + $0x1f0] sm:$0xff] }
0x108f   :  { %2948 = vmatprep.subr.mxu1 %v1682_v9 }
0x1090   :  { %2949 = vmatpush3.msra.mxu1 %v1682_v9  ;;  %v2020_v9 = vld [vmem:[#allocation2 + $0x1e8] sm:$0xff] }
0x1091   :  { %2950 = vmatprep.subr.mxu1 %v1680_v12 }
0x1092   :  { %2951 = vmatpush3.msra.mxu1 %v1680_v12  ;;  %v2019_v12 = vld [vmem:[#allocation2 + $0x1e0] sm:$0xff] }
0x1093   :  { %2952 = vmatprep.subr.mxu1 %v1678_v39 }
0x1094   :  { %2953 = vmatpush3.msra.mxu1 %v1678_v39  ;;  %v2018_v39 = vld [vmem:[#allocation2 + $0x1d8] sm:$0xff] }
0x1095   :  { %2954 = vmatprep.subr.mxu1 %v1676_v18 }
0x1096   :  { %2955 = vmatpush3.msra.mxu1 %v1676_v18  ;;  %v2017_v18 = vld [vmem:[#allocation2 + $0x1d0] sm:$0xff] }
0x1097   :  { %2970 = vmatprep.subr.mxu1 %v1917_v27 }
0x1147   :  { %v2939_v17 = vpop.f32.mrf.mxu1 }
0x1148   :  { %3083 = vrcp.f32 %v2939_v17  ;;  %v2014_v17 = vld [vmem:[#allocation2 + $0x1b8] sm:$0xff] }
0x1149   :  { %v1654_v36 = vpop.f32.mrf.mxu1 }
0x114a   :  { %3085 = vrcp.f32 %v1654_v36  ;;  %v2532_v36 = vld [vmem:[#allocation2 + $0x1b0] ss:$0 sm:$0xff] }
0x1155   :  { %v3084_v3 = vpop.eup %3083 }
0x1156   :  { %v1666_v61 = vmul.f32 %v3084_v3, %v3082_v30  ;;  %v2023_v30 = vld [vmem:[#allocation2 + $0x200] sm:$0xff] }
0x1157   :  { %v3086_v37 = vpop.eup %3085 }
0x1158   :  { %v1665_v45 = vmul.f32 %v3086_v37, %v3080_v58  ;;  %v2024_v58 = vld [vmem:[#allocation2 + $0x208] sm:$0xff] }
0x115a   :  { %2956 = vmatprep.mubr.msk.f32.mxu1 %vm573_vm1, %v1665_v45 }
0x115b   :  { %2957 = vmatmul.mubr.msk.f32.vlgmr.msra.gmra.mxu1 %vm573_vm1, %v1666_v61 }
0x115c   :  { %2971 = vmatpush3.msra.mxu1 %v1917_v27 }
0x115d   :  { %2972 = vmatprep.subr.mxu1 %v1916_v42 }
0x115e   :  { %2973 = vmatpush3.msra.mxu1 %v1916_v42 }
0x115f   :  { %2974 = vmatprep.subr.mxu1 %v1915_v50 }
0x1160   :  { %2975 = vmatpush3.msra.mxu1 %v1915_v50 }
0x1161   :  { %2976 = vmatprep.subr.mxu1 %v1914_v40 }
0x1162   :  { %2977 = vmatpush3.msra.mxu1 %v1914_v40 }
0x121b   :  { %v2958_v26 = vpop.f32.mrf.mxu1 }
0x121d   :  { %v1771_v29 = vpop.f32.mrf.mxu1 }
0x121e   :  { %2967 = vmatprep.mubr.msk.f32.mxu0 %vm58_vm0, %v1771_v29 }
0x121f   :  { %2968 = vmatmul.mubr.msk.f32.vlgmr.msra.gmra.mxu0 %vm58_vm0, %v2958_v26 }
0x1220   :  { %2982 = vmatpush3.msra.mxu0 %v2029_v51 }
0x1221   :  { %2983 = vmatprep.subr.mxu0 %v2028_v52 }
0x1222   :  { %2984 = vmatpush3.msra.mxu0 %v2028_v52 }
0x1223   :  { %2985 = vmatprep.subr.mxu0 %v2027_v55 }
0x1224   :  { %2986 = vmatpush3.msra.mxu0 %v2027_v55  ;;  %v2157_v55 = vld [vmem:[#allocation2 + $0x268] sm:$0xff] }
0x1225   :  { %2987 = vmatprep.subr.mxu0 %v2026_v60  ;;  %3016 = vmatprep.subr.mxu1 %v2157_v55 }
0x1226   :  { %2988 = vmatpush3.msra.mxu0 %v2026_v60 }
0x1227   :  { %2989 = vmatprep.subr.mxu0 %v2025_v62 }
0x1228   :  { %2990 = vmatpush3.msra.mxu0 %v2025_v62 }
0x1229   :  { %2991 = vmatprep.subr.mxu0 %v2024_v58 }
0x122a   :  { %2992 = vmatpush3.msra.mxu0 %v2024_v58 }
0x122b   :  { %2993 = vmatprep.subr.mxu0 %v2023_v30 }
0x122c   :  { %2994 = vmatpush3.msra.mxu0 %v2023_v30  ;;  %v2538_v30 = vld [vmem:[#allocation2 + $0x270] ss:$0 sm:$0xff] }
0x122d   :  { %2995 = vmatprep.subr.mxu0 %v2022_v1 }
0x122e   :  { %2996 = vmatpush3.msra.mxu0 %v2022_v1 }
0x122f   :  { %2997 = vmatprep.subr.mxu0 %v2021_v34 }
0x1230   :  { %2998 = vmatpush3.msra.mxu0 %v2021_v34 }
0x1231   :  { %2999 = vmatprep.subr.mxu0 %v2020_v9 }
0x1232   :  { %3000 = vmatpush3.msra.mxu0 %v2020_v9 }
0x1233   :  { %3001 = vmatprep.subr.mxu0 %v2019_v12 }
0x1234   :  { %3002 = vmatpush3.msra.mxu0 %v2019_v12 }
0x1235   :  { %3003 = vmatprep.subr.mxu0 %v2018_v39 }
0x1236   :  { %3004 = vmatpush3.msra.mxu0 %v2018_v39 }
0x1237   :  { %3005 = vmatprep.subr.mxu0 %v2017_v18 }
0x1238   :  { %3006 = vmatpush3.msra.mxu0 %v2017_v18 }
0x1239   :  { %3007 = vmatprep.subr.mxu0 %v2016_v35 }
0x123a   :  { %3008 = vmatpush3.msra.mxu0 %v2016_v35 }
0x123b   :  { %3009 = vmatprep.subr.mxu0 %v2015_v14 }
0x123c   :  { %3010 = vmatpush3.msra.mxu0 %v2015_v14 }
0x123d   :  { %3011 = vmatprep.subr.mxu0 %v2014_v17 }
0x123e   :  { %3012 = vmatpush3.msra.mxu0 %v2014_v17 }
0x12df   :  { %v2969_v44 = vpop.f32.mrf.mxu0 }
0x12e0   :  { %v1866_v33 = vadd.f32 %v2969_v44, %v3472_v59 }
0x12e1   :  { %v1856_v38 = vpop.f32.mrf.mxu0 }
0x12e2   :  { %v3600_v41 = vadd.f32 %v2529_v31, %v1866_v33  ;;  %v1865_v53 = vadd.f32 %v1856_v38, %v3475_v54 }
0x12e4   :  { %v3603_v48 = vadd.f32 %v2529_v31, %v1865_v53  ;;  %v1879_v4 = vsel %vm58_vm0, %v3600_v41, 0.0 }
0x12e5   :  { %1880 = vadd.xlane.f32.xlu1 %v1879_v4 }
0x12e6   :  { %v1876_v46 = vsel %vm58_vm0, %v3603_v48, 0.0 }
0x12e7   :  { %1877 = vadd.xlane.f32.xlu0 %v1876_v46 }
0x136e   :  { %v1881_v5 = vpop.xlane.xlu1 %1880 }
0x136f   :  { %v1883_v10 = vmul.f32 0.03125, %v1881_v5  ;;  %v2535_v5 = vld [vmem:[#allocation2 + $0x238] ss:$0 sm:$0xff] }
0x1370   :  { %v1878_v13 = vpop.xlane.xlu0 %1877 }
0x1371   :  { %v1882_v15 = vmul.f32 0.03125, %v1878_v13  ;;  %v1885_v59 = vsub.f32 %v3600_v41, %v1883_v10 }
0x1373   :  { %v1884_v19 = vsub.f32 %v3603_v48, %v1882_v15  ;;  %v1887_v23 = vmul.f32 %v1885_v59, %v1885_v59 }
0x1375   :  { %v1886_v20 = vmul.f32 %v1884_v19, %v1884_v19  ;;  %v1891_v24 = vsel %vm58_vm0, %v1887_v23, 0.0 }
0x1377   :  { %v1888_v54 = vsel %vm58_vm0, %v1886_v20, 0.0 }
0x1378   :  { %1889 = vadd.xlane.f32.xlu0 %v1888_v54 }
0x137c   :  { %1892 = vadd.xlane.f32.xlu0 %v1891_v24 }
0x1401   :  { %v1890_v0 = vpop.xlane.xlu0 %1889 }
0x1402   :  { %v1894_v56 = vmul.f32 0.03125, %v1890_v0  ;;  %v2156_v0 = vld [vmem:[#allocation2 + $0x260] sm:$0xff] }
0x1404   :  { %v1896_v2 = vadd.f32 1e-05, %v1894_v56  ;;  %v2155_v56 = vld [vmem:[#allocation2 + $0x258] sm:$0xff] }
0x1405   :  { %v1893_v11 = vpop.xlane.xlu0 %1892 }
0x1406   :  { %3087 = vrsqrt.f32 %v1896_v2  ;;  %v1895_v49 = vmul.f32 0.03125, %v1893_v11  ;;  %v2154_v2 = vld [vmem:[#allocation2 + $0x250] sm:$0xff] }
0x1408   :  { %v1897_v47 = vadd.f32 1e-05, %v1895_v49 }
0x140a   :  { %3089 = vrsqrt.f32 %v1897_v47 }
0x1413   :  { %v3088_v16 = vpop.eup %3087 }
0x1414   :  { %v1900_v21 = vmul.f32 %v3088_v16, %v1884_v19 }
0x1416   :  { %v1906_v28 = vmul.f32 %v2530_v57, %v1900_v21 }
0x1417   :  { %v3090_v6 = vpop.eup %3089 }
0x1418   :  { %v1901_v25 = vmul.f32 %v3090_v6, %v1885_v59  ;;  %v1912_v7 = vadd.f32 %v2531_v63, %v1906_v28  ;;  %v2536_v28 = vld [vmem:[#allocation2 + $0x240] ss:$0 sm:$0xff] }
0x141a   :  { %v1907_v8 = vmul.f32 %v2530_v57, %v1901_v25  ;;  %2978 = vmatprep.mubr.msk.f32.mxu1 %vm58_vm0, %v1912_v7 }
0x141c   :  { %v1913_v32 = vadd.f32 %v2531_v63, %v1907_v8 }
0x141e   :  { %2979 = vmatmul.mubr.msk.f32.vlgmr.msra.gmra.mxu1 %vm58_vm0, %v1913_v32  ;;  %v2537_v32 = vld [vmem:[#allocation2 + $0x248] ss:$0 sm:$0xff] }
0x141f   :  { %3017 = vmatpush3.msra.mxu1 %v2157_v55  ;;  %v2542_v55 = vld [vmem:[#allocation2 + $0x280] ss:$0 sm:$0xff] }
0x1420   :  { %3018 = vmatprep.subr.mxu1 %v2156_v0 }
0x1421   :  { %3019 = vmatpush3.msra.mxu1 %v2156_v0 }
0x1422   :  { %3020 = vmatprep.subr.mxu1 %v2155_v56 }
0x1423   :  { %3021 = vmatpush3.msra.mxu1 %v2155_v56 }
0x1424   :  { %3022 = vmatprep.subr.mxu1 %v2154_v2 }
0x1425   :  { %3023 = vmatpush3.msra.mxu1 %v2154_v2 }
0x14de   :  { %v2980_v3 = vpop.f32.mrf.mxu1 }
0x14df   :  { %v2001_v37 = vadd.f32 %v2980_v3, %v2532_v36 }
0x14e0   :  { %v1995_v45 = vpop.f32.mrf.mxu1 }
0x14e1   :  { %v2007_v61 = vmul.f32 0.70710677, %v2001_v37  ;;  %v1996_v22 = vadd.f32 %v2532_v36, %v1995_v45  ;;  %v2005_v38 = vmul.f32 0.5, %v2001_v37 }
0x14e3   :  { %3091 = verf.f32 %v2007_v61  ;;  %v2006_v43 = vmul.f32 0.70710677, %v1996_v22  ;;  %v2004_v31 = vmul.f32 0.5, %v1996_v22 }
0x14e5   :  { %3093 = verf.f32 %v2006_v43 }
0x14f0   :  { %v3092_v26 = vpop.eup %3091 }
0x14f1   :  { %v2011_v44 = vadd.f32 1.0, %v3092_v26 }
0x14f2   :  { %v3094_v29 = vpop.eup %3093 }
0x14f3   :  { %v2010_v33 = vadd.f32 1.0, %v3094_v29  ;;  %v2013_v4 = vmul.f32 %v2011_v44, %v2005_v38 }
0x14f5   :  { %v2012_v53 = vmul.f32 %v2010_v33, %v2004_v31 }
0x14f7   :  { %3013 = vmatprep.mubr.f32.mxu0 %v2012_v53 }
0x14f8   :  { %3014 = vmatmul.mubr.f32.vlgmr.msra.gmra.mxu0 %v2013_v4 }
0x15b8   :  { %v3015_v46 = vpop.f32.mrf.mxu0 }
0x15b9   :  { %v2106_v10 = vadd.f32 %v3015_v46, %v3600_v41 }
0x15ba   :  { %v2096_v13 = vpop.f32.mrf.mxu0 }
0x15bb   :  { %v2105_v15 = vadd.f32 %v2096_v13, %v3603_v48  ;;  %v2113_v59 = vadd.f32 %v2535_v5, %v2106_v10  ;;  %v2297_v10 = vld [vmem:[#allocation2 + $0x2a0] sm:$0xff]  ;;  %v2296_v13 = vld [vmem:[#allocation2 + $0x298] sm:$0xff] }
0x15bc   :  { %3027 = vmatprep.subr.mxu1 %v2297_v10 }
0x15bd   :  { %v2119_v19 = vsel %vm58_vm0, %v2113_v59, 0.0  ;;  %v2112_v20 = vadd.f32 %v2535_v5, %v2105_v15  ;;  %v2295_v15 = vld [vmem:[#allocation2 + $0x290] sm:$0xff] }
0x15be   :  { %2120 = vadd.xlane.f32.xlu1 %v2119_v19  ;;  %v2387_v19 = vld [vmem:[#allocation2 + $0x2c8] sm:$0xff] }
0x15bf   :  { %v2116_v54 = vsel %vm58_vm0, %v2112_v20, 0.0 }
0x15c0   :  { %2117 = vadd.xlane.f32.xlu0 %v2116_v54 }
0x1647   :  { %v2121_v23 = vpop.xlane.xlu1 %2120 }
0x1648   :  { %v2123_v24 = vmul.f32 0.03125, %v2121_v23 }
0x1649   :  { %v2118_v27 = vpop.xlane.xlu0 %2117 }
0x164a   :  { %v2125_v42 = vsub.f32 %v2113_v59, %v2123_v24  ;;  %v2122_v50 = vmul.f32 0.03125, %v2118_v27  ;;  %v2294_v59 = vld [vmem:[#allocation2 + $0x288] sm:$0xff] }
0x164c   :  { %v2124_v40 = vsub.f32 %v2112_v20, %v2122_v50  ;;  %v2127_v51 = vmul.f32 %v2125_v42, %v2125_v42 }
0x164e   :  { %v2131_v41 = vsel %vm58_vm0, %v2127_v51, 0.0  ;;  %v2126_v52 = vmul.f32 %v2124_v40, %v2124_v40 }
0x164f   :  { %2132 = vadd.xlane.f32.xlu1 %v2131_v41 }
0x1650   :  { %v2128_v48 = vsel %vm58_vm0, %v2126_v52, 0.0 }
0x1651   :  { %2129 = vadd.xlane.f32.xlu0 %v2128_v48 }
0x16d8   :  { %v2133_v11 = vpop.xlane.xlu1 %2132 }
0x16d9   :  { %v2135_v49 = vmul.f32 0.03125, %v2133_v11  ;;  %v2386_v11 = vld [vmem:[#allocation2 + $0x2c0] sm:$0xff] }
0x16da   :  { %v2130_v47 = vpop.xlane.xlu0 %2129 }
0x16db   :  { %v2137_v16 = vadd.f32 1e-05, %v2135_v49  ;;  %v2134_v57 = vmul.f32 0.03125, %v2130_v47  ;;  %v2385_v49 = vld [vmem:[#allocation2 + $0x2b8] sm:$0xff]  ;;  %v2384_v47 = vld [vmem:[#allocation2 + $0x2b0] sm:$0xff] }
0x16dd   :  { %3095 = vrsqrt.f32 %v2137_v16  ;;  %v2136_v21 = vadd.f32 1e-05, %v2134_v57  ;;  %v2543_v57 = vld [vmem:[#allocation2 + $0x2a8] ss:$0 sm:$0xff] }
0x16df   :  { %3097 = vrsqrt.f32 %v2136_v21 }
0x16ea   :  { %v3096_v63 = vpop.eup %3095 }
0x16eb   :  { %v2141_v6 = vmul.f32 %v3096_v63, %v2125_v42 }
0x16ec   :  { %v3098_v25 = vpop.eup %3097 }
0x16ed   :  { %v2140_v7 = vmul.f32 %v3098_v25, %v2124_v40  ;;  %v2147_v8 = vmul.f32 %v2536_v28, %v2141_v6  ;;  %v2541_v40 = vld [vmem:[#allocation2 + $0x278] ss:$0 sm:$0xff] }
0x16ef   :  { %v2146_v60 = vmul.f32 %v2536_v28, %v2140_v7  ;;  %v3623_v58 = vadd.f32 %v2537_v32, %v2147_v8 }
0x16f1   :  { %v3621_v62 = vadd.f32 %v2537_v32, %v2146_v60 }
0x16f3   :  { %3024 = vmatprep.mubr.msk.f32.mxu1 %vm58_vm0, %v3621_v62 }
0x16f4   :  { %3025 = vmatmul.mubr.msk.f32.vlgmr.msra.gmra.mxu1 %vm58_vm0, %v3623_v58 }
0x16f5   :  { %3028 = vmatpush3.msra.mxu1 %v2297_v10 }
0x16f6   :  { %3029 = vmatprep.subr.mxu1 %v2296_v13 }
0x16f7   :  { %3030 = vmatpush3.msra.mxu1 %v2296_v13 }
0x16f8   :  { %3031 = vmatprep.subr.mxu1 %v2295_v15 }
0x16f9   :  { %3032 = vmatpush3.msra.mxu1 %v2295_v15 }
0x16fa   :  { %3033 = vmatprep.subr.mxu1 %v2294_v59 }
0x16fb   :  { %3034 = vmatpush3.msra.mxu1 %v2294_v59 }
0x16fc   :  { %3038 = vmatprep.subr.mxu1 %v2387_v19 }
0x17b4   :  { %v3026_v1 = vpop.f32.mrf.mxu1 }
0x17b5   :  { %v2241_v34 = vadd.f32 %v3026_v1, %v2538_v30 }
0x17b6   :  { %v2235_v9 = vpop.f32.mrf.mxu1 }
0x17b7   :  { %v2247_v12 = vmul.f32 0.70710677, %v2241_v34  ;;  %v2236_v39 = vadd.f32 %v2538_v30, %v2235_v9  ;;  %v2245_v14 = vmul.f32 0.5, %v2241_v34 }
0x17b9   :  { %3099 = verf.f32 %v2247_v12  ;;  %v2246_v18 = vmul.f32 0.70710677, %v2236_v39  ;;  %v2244_v3 = vmul.f32 0.5, %v2236_v39 }
0x17bb   :  { %3101 = verf.f32 %v2246_v18 }
0x17c6   :  { %v3100_v35 = vpop.eup %3099 }
0x17c7   :  { %v2251_v17 = vadd.f32 1.0, %v3100_v35 }
0x17c8   :  { %v3102_v36 = vpop.eup %3101 }
0x17c9   :  { %v2253_v37 = vmul.f32 %v2251_v17, %v2245_v14  ;;  %v2250_v45 = vadd.f32 1.0, %v3102_v36 }
0x17cb   :  { %v2259_v61 = vsel %vm58_vm0, %v2253_v37, 0.0  ;;  %v2252_v22 = vmul.f32 %v2250_v45, %v2244_v3 }
0x17cc   :  { %2260 = vadd.xlane.f32.xlu1 %v2259_v61 }
0x17cd   :  { %v2256_v43 = vsel %vm58_vm0, %v2252_v22, 0.0 }
0x17ce   :  { %2257 = vadd.xlane.f32.xlu0 %v2256_v43 }
0x1855   :  { %v2261_v26 = vpop.xlane.xlu1 %2260 }
0x1856   :  { %v2263_v29 = vmul.f32 0.03125, %v2261_v26 }
0x1857   :  { %v2258_v44 = vpop.xlane.xlu0 %2257 }
0x1858   :  { %v2265_v31 = vsub.f32 %v2253_v37, %v2263_v29  ;;  %v2262_v33 = vmul.f32 0.03125, %v2258_v44 }
0x185a   :  { %v2264_v38 = vsub.f32 %v2252_v22, %v2262_v33  ;;  %v2267_v53 = vmul.f32 %v2265_v31, %v2265_v31 }
0x185c   :  { %v2271_v4 = vsel %vm58_vm0, %v2267_v53, 0.0  ;;  %v2266_v46 = vmul.f32 %v2264_v38, %v2264_v38 }
0x185d   :  { %2272 = vadd.xlane.f32.xlu1 %v2271_v4 }
0x185e   :  { %v2268_v5 = vsel %vm58_vm0, %v2266_v46, 0.0 }
0x185f   :  { %2269 = vadd.xlane.f32.xlu0 %v2268_v5 }
0x18e6   :  { %v2273_v20 = vpop.xlane.xlu1 %2272 }
0x18e7   :  { %v2275_v54 = vmul.f32 0.03125, %v2273_v20 }
0x18e8   :  { %v2270_v23 = vpop.xlane.xlu0 %2269 }
0x18e9   :  { %v2277_v24 = vadd.f32 1e-05, %v2275_v54  ;;  %v2274_v27 = vmul.f32 0.03125, %v2270_v23 }
0x18eb   :  { %3103 = vrsqrt.f32 %v2277_v24  ;;  %v2276_v42 = vadd.f32 1e-05, %v2274_v27 }
0x18ed   :  { %3105 = vrsqrt.f32 %v2276_v42 }
0x18f8   :  { %v3104_v50 = vpop.eup %3103 }
0x18f9   :  { %v2281_v51 = vmul.f32 %v3104_v50, %v2265_v31 }
0x18fa   :  { %v3106_v41 = vpop.eup %3105 }
0x18fb   :  { %v2280_v52 = vmul.f32 %v3106_v41, %v2264_v38  ;;  %v2287_v48 = vmul.f32 %v2541_v40, %v2281_v51 }
0x18fd   :  { %v2286_v0 = vmul.f32 %v2541_v40, %v2280_v52  ;;  %v2293_v2 = vadd.f32 %v2542_v55, %v2287_v48 }
0x18ff   :  { %v2292_v56 = vadd.f32 %v2542_v55, %v2286_v0 }
0x1901   :  { %3035 = vmatprep.mubr.msk.f32.mxu1 %vm58_vm0, %v2292_v56 }
0x1902   :  { %3036 = vmatmul.mubr.msk.f32.vlgmr.msra.gmra.mxu1 %vm58_vm0, %v2293_v2 }
0x1903   :  { %3039 = vmatpush3.msra.mxu1 %v2387_v19  ;;  %3046 = vmatprep.mubr.msk.f32.mxu1 %vm58_vm0, %v3621_v62 }
0x1904   :  { %3040 = vmatprep.subr.mxu1 %v2386_v11 }
0x1905   :  { %3041 = vmatpush3.msra.mxu1 %v2386_v11 }
0x1906   :  { %3042 = vmatprep.subr.mxu1 %v2385_v49 }
0x1907   :  { %3043 = vmatpush3.msra.mxu1 %v2385_v49 }
0x1908   :  { %3044 = vmatprep.subr.mxu1 %v2384_v47 }
0x1909   :  { %3045 = vmatpush3.msra.mxu1 %v2384_v47 }
0x190a   :  { %3047 = vmatmul.mubr.msk.f32.vlgmr.msra.gmra.mxu1 %vm58_vm0, %v3623_v58 }
0x19c2   :  { %v3037_v16 = vpop.f32.mrf.mxu1 }
0x19c3   :  { %v2381_v63 = vadd.f32 %v3037_v16, %v2543_v57 }
0x19c4   :  { %v2375_v21 = vpop.f32.mrf.mxu1 }
0x19c5   :  { %v2376_v6 = vadd.f32 %v2543_v57, %v2375_v21 }
0x19ca   :  { %v3048_v28 = vpop.f32.mrf.mxu1 }
0x19cb   :  { %v2464_v25 = vadd.f32 %v3048_v28, %v2381_v63 }
0x19cc   :  { %v2454_v7 = vpop.f32.mrf.mxu1 }
0x19cd   :  { %2466 = vst [vmem:[%s3648_s3 + $0x8] sm:$0xff] %v2464_v25  ;;  %v2463_v8 = vadd.f32 %v2454_v7, %v2376_v6 }
0x19cf   :  { %2465 = vst [vmem:[%s3648_s3] sm:$0xff] %v2463_v8 }
0x19d0   :  { %2471 = vsyncpa [#allocation3], 1 }

</bundles_post_ra>
